<compile_context>
chip_gen: v7x
topology: tpu7x:2x2x1
jax: 0.10.0
libtpu: 0.0.40
codegen_flags: <defaults>
</compile_context>

<pallas_src>
import jax
import jax.numpy as jnp
from jax.experimental import pallas as pl
from jax.experimental.pallas import tpu as pltpu

BN_EPS = 1e-5   # torch.nn.BatchNorm1d default eps
LANE = 128      # TPU lane width


def _round_up(x, m):
    return ((x + m - 1) // m) * m


# ----------------------------------------------------------------------------
# Pallas kernel: one batch tile (TB rows) end to end.  Everything is 2-D and
# 128-lane padded; every heavy op is a bf16 MXU dot with f32 accumulation.
# ----------------------------------------------------------------------------
def hitin_kernel(pooled_ref,                      # (TB, Hb_p)    bf16
                 wp_ref, bp_ref,                  # (Hb_p, E_p) bf16 / (1, E_p) f32
                 dupw_ref, dupb_ref,              # (TB*N0, TB) bf16 / (TB*N0, 1) f32
                 adj0_ref, w0_ref, b0_ref,        # TIN layer 0 (BN folded into w/b)
                 adj1_ref, w1_ref, b1_ref,        # TIN layer 1 (BN folded into w/b)
                 pool0_ref, pool1_ref, pool2_ref, # per-layer mean-pool operators
                 wc0_ref, wc1_ref, wc2_ref, bc_ref,
                 out_ref):                        # (TB, L_p)     f32
    f32, bf16 = jnp.float32, jnp.bfloat16

    # text projection: (TB, Hb_p) @ (Hb_p, E_p)
    proj = jnp.dot(pooled_ref[...], wp_ref[...],
                   preferred_element_type=f32) + bp_ref[...]

    # label duplication (Linear(1, L) along the node axis) as one block-diag dot
    x0 = jnp.dot(dupw_ref[...], proj.astype(bf16),
                 preferred_element_type=f32) + dupb_ref[...]            # (TB*N0, E_p)

    def tin_layer(x, adj_ref, w_ref, b_ref):
        # adjacency aggregate + (Linear with folded eval-BatchNorm1d) + ReLU
        y = jnp.dot(adj_ref[...], x.astype(bf16), preferred_element_type=f32)
        h = jnp.dot(y.astype(bf16), w_ref[...],
                    preferred_element_type=f32) + b_ref[...]
        return jnp.maximum(h, 0.0)

    x1 = tin_layer(x0, adj0_ref, w0_ref, b0_ref)                        # (TB*N1, E_p)
    x2 = tin_layer(x1, adj1_ref, w1_ref, b1_ref)                        # (TB*N2, E_p)

    # per-layer mean pooling as MXU dots (no XLU sublane reduce)
    p0 = jnp.dot(pool0_ref[...], x0.astype(bf16), preferred_element_type=f32)
    p1 = jnp.dot(pool1_ref[...], x1.astype(bf16), preferred_element_type=f32)
    p2 = jnp.dot(pool2_ref[...], x2.astype(bf16), preferred_element_type=f32)

    # classifier: concat replaced by three partial dots accumulated in f32
    logits = (jnp.dot(p0.astype(bf16), wc0_ref[...], preferred_element_type=f32)
              + jnp.dot(p1.astype(bf16), wc1_ref[...], preferred_element_type=f32)
              + jnp.dot(p2.astype(bf16), wc2_ref[...], preferred_element_type=f32)
              + bc_ref[...])
    out_ref[...] = logits


# ----------------------------------------------------------------------------
# Wrapper: fold BN, pad to lane-dense shapes, build block-diagonal operators,
# tile the batch over a 1-D "parallel" grid.
# ----------------------------------------------------------------------------
def hitin_forward(pooled, p, *, batch_tile=16):
    f32, bf16 = jnp.float32, jnp.bfloat16
    B, Hb = pooled.shape
    E = p['wp_t'].shape[1]
    N0 = p['wdup'].shape[0]
    N1 = p['adj0'].shape[0]
    N2 = p['adj1'].shape[0]
    L = p['wc_t'].shape[1]

    tb = batch_tile
    Hb_p = _round_up(Hb, LANE)
    E_p = _round_up(E, LANE)
    L_p = _round_up(L, LANE)
    B_p = _round_up(B, tb)

    def pad2(a, rows, cols, dtype):
        a = jnp.asarray(a, f32)
        return jnp.pad(a, ((0, rows - a.shape[0]),
                           (0, cols - a.shape[1]))).astype(dtype)

    # --- fold eval-mode BatchNorm1d into the preceding Linear ---------------
    def fold_bn(w_t, b, g, be, m, v):
        scale = g.reshape(-1) * jax.lax.rsqrt(v.reshape(-1) + BN_EPS)
        wf = w_t * scale[None, :]
        bf = (b.reshape(-1) - m.reshape(-1)) * scale + be.reshape(-1)
        return wf, bf.reshape(1, -1)

    w0f, b0f = fold_bn(p['w0_t'], p['b0'], p['g0'], p['be0'], p['m0'], p['v0'])
    w1f, b1f = fold_bn(p['w1_t'], p['b1'], p['g1'], p['be1'], p['m1'], p['v1'])

    eye = jnp.eye(tb, dtype=f32)

    # --- pad / pre-layout everything once (lane dims -> multiples of 128) ---
    pooled_p = pad2(pooled, B_p, Hb_p, bf16)
    wp = pad2(p['wp_t'], Hb_p, E_p, bf16)
    bp = pad2(p['bp'].reshape(1, -1), 1, E_p, f32)

    # block-diagonal operators so the whole batch tile rides one MXU dot each.
    # TODO(synk): for large label trees replace the dense kron adjacency with a
    #             scalar-prefetch child-index gather (each adj row is ~2-sparse).
    dupw = jnp.kron(eye, p['wdup'].reshape(N0, 1)).astype(bf16)         # (tb*N0, tb)
    dupb = jnp.tile(p['bdup'].reshape(N0, 1), (tb, 1)).astype(f32)      # (tb*N0, 1)
    adj0 = jnp.kron(eye, p['adj0']).astype(bf16)                        # (tb*N1, tb*N0)
    adj1 = jnp.kron(eye, p['adj1']).astype(bf16)                        # (tb*N2, tb*N1)

    w0 = pad2(w0f, E_p, E_p, bf16)
    b0 = pad2(b0f, 1, E_p, f32)
    w1 = pad2(w1f, E_p, E_p, bf16)
    b1 = pad2(b1f, 1, E_p, f32)

    pool0 = jnp.kron(eye, jnp.full((1, N0), 1.0 / N0, f32)).astype(bf16)
    pool1 = jnp.kron(eye, jnp.full((1, N1), 1.0 / N1, f32)).astype(bf16)
    pool2 = jnp.kron(eye, jnp.full((1, N2), 1.0 / N2, f32)).astype(bf16)

    wc = p['wc_t']
    wc0 = pad2(wc[0 * E:1 * E], E_p, L_p, bf16)
    wc1 = pad2(wc[1 * E:2 * E], E_p, L_p, bf16)
    wc2 = pad2(wc[2 * E:3 * E], E_p, L_p, bf16)
    bc = pad2(p['bc'].reshape(1, -1), 1, L_p, f32)

    consts = [wp, bp, dupw, dupb, adj0, w0, b0, adj1, w1, b1,
              pool0, pool1, pool2, wc0, wc1, wc2, bc]

    grid = (B_p // tb,)
    in_specs = [pl.BlockSpec((tb, Hb_p), lambda i: (i, 0))]
    in_specs += [pl.BlockSpec(a.shape, lambda i: (0, 0)) for a in consts]
    out_specs = pl.BlockSpec((tb, L_p), lambda i: (i, 0))

    out = pl.pallas_call(
        hitin_kernel,
        out_shape=jax.ShapeDtypeStruct((B_p, L_p), f32),
        grid=grid,
        in_specs=in_specs,
        out_specs=out_specs,
        compiler_params=pltpu.CompilerParams(
            # batch tiles are independent -> shard grid across the 2 TCs on v7x
            dimension_semantics=("parallel",),
            # tiny footprint here; 32 MiB fits scoped VMEM on v5e/v6e/v7x.
            # (re-derive batch_tile for v7x's 64 MiB physical VMEM at BERT scale)
            vmem_limit_bytes=32 * 1024 * 1024,
        ),
    )(pooled_p, *consts)

    return out[:B, :L]


# ----------------------------------------------------------------------------
# Pure-JAX f32 reference with the module's math (BN NOT folded, no padding)
# ----------------------------------------------------------------------------
def reference_forward(pooled, p):
    proj = pooled @ p['wp_t'] + p['bp']
    x = proj[:, None, :] * p['wdup'][None, :, :] + p['bdup'][None, :, :]

    def mlp_block(y, w_t, b, g, be, m, v):
        # spec MLP: Linear -> BatchNorm1d over the hidden axis (eval) -> ReLU
        h = jnp.einsum('bne,eh->bnh', y, w_t) + b
        h = (h - m) * jax.lax.rsqrt(v + BN_EPS) * g + be
        return jnp.maximum(h, 0.0)

    layers = [x.mean(axis=-2)]
    x = mlp_block(jnp.einsum('rc,bce->bre', p['adj0'], x),
                  p['w0_t'], p['b0'], p['g0'], p['be0'], p['m0'], p['v0'])
    layers.append(x.mean(axis=-2))
    x = mlp_block(jnp.einsum('rc,bce->bre', p['adj1'], x),
                  p['w1_t'], p['b1'], p['g1'], p['be1'], p['m1'], p['v1'])
    layers.append(x.mean(axis=-2))
    cat = jnp.concatenate(layers, axis=-1)
    return cat @ p['wc_t'] + p['bc']


def adj_from_edges(edges, rows, cols):
    r = jnp.array([e[0] for e in edges], dtype=jnp.int32)
    c = jnp.array([e[1] for e in edges], dtype=jnp.int32)
    return jnp.zeros((rows, cols), jnp.float32).at[r, c].set(1.0)


if __name__ == "__main__":
    # Small shapes: batch 32, BERT hidden 32, node embedding 16, 8 labels,
    # tree 8 leaves -> 4 parents -> 2 roots (=> 2 TIN layers of the spec MLP).
    B, Hb, E, L = 32, 32, 16, 8
    N0, N1, N2 = 8, 4, 2
    key = jax.random.PRNGKey(0)
    ks = jax.random.split(key, 20)

    adj0 = adj_from_edges([(0, 0), (0, 1), (1, 2), (1, 3),
                           (2, 4), (2, 5), (3, 6), (3, 7)], N1, N0)     # (4, 8)
    adj1 = adj_from_edges([(0, 0), (0, 1), (1, 2), (1, 3)], N2, N1)     # (2, 4)

    s = 0.1
    params = {
        'wp_t':  s * jax.random.normal(ks[1],  (Hb, E), jnp.float32),
        'bp':    s * jax.random.normal(ks[2],  (1, E),  jnp.float32),
        'wdup':  s * jax.random.normal(ks[3],  (N0, 1), jnp.float32),
        'bdup':  s * jax.random.normal(ks[4],  (N0, 1), jnp.float32),
        'adj0':  adj0,
        'w0_t':  s * jax.random.normal(ks[5],  (E, E),  jnp.float32),
        'b0':    s * jax.random.normal(ks[6],  (1, E),  jnp.float32),
        'g0':    1.0 + s * jax.random.normal(ks[7],  (1, E), jnp.float32),
        'be0':   s * jax.random.normal(ks[8],  (1, E),  jnp.float32),
        'm0':    s * jax.random.normal(ks[9],  (1, E),  jnp.float32),
        'v0':    0.5 + jnp.abs(jax.random.normal(ks[10], (1, E), jnp.float32)),
        'adj1':  adj1,
        'w1_t':  s * jax.random.normal(ks[11], (E, E),  jnp.float32),
        'b1':    s * jax.random.normal(ks[12], (1, E),  jnp.float32),
        'g1':    1.0 + s * jax.random.normal(ks[13], (1, E), jnp.float32),
        'be1':   s * jax.random.normal(ks[14], (1, E),  jnp.float32),
        'm1':    s * jax.random.normal(ks[15], (1, E),  jnp.float32),
        'v1':    0.5 + jnp.abs(jax.random.normal(ks[16], (1, E), jnp.float32)),
        'wc_t':  s * jax.random.normal(ks[17], (3 * E, L), jnp.float32),
        'bc':    s * jax.random.normal(ks[18], (1, L),   jnp.float32),
    }

    # synthetic BERT pooler_output
    pooled = jax.random.normal(ks[0], (B, Hb), jnp.float32)

    out = jax.block_until_ready(hitin_forward(pooled, params, batch_tile=16))
    ref = reference_forward(pooled, params)

    assert out.shape == (B, L), out.shape
    # bf16 matmul operands -> compare against the f32 reference at bf16 tolerance
    assert jnp.allclose(out, ref, atol=3e-2, rtol=3e-2), (
        float(jnp.max(jnp.abs(out - ref))))
    print("KERNEL_OK")
</pallas_src>

<mosaic_0001>
module attributes {stable_mosaic.version = 11 : i64} {
  func.func @hitin_kernel(%arg0: i32, %arg1: memref<16x128xbf16, #tpu.memory_space<vmem>>, %arg2: memref<128x128xbf16, #tpu.memory_space<vmem>>, %arg3: memref<1x128xf32, #tpu.memory_space<vmem>>, %arg4: memref<128x16xbf16, #tpu.memory_space<vmem>>, %arg5: memref<128x1xf32, #tpu.memory_space<vmem>>, %arg6: memref<64x128xbf16, #tpu.memory_space<vmem>>, %arg7: memref<128x128xbf16, #tpu.memory_space<vmem>>, %arg8: memref<1x128xf32, #tpu.memory_space<vmem>>, %arg9: memref<32x64xbf16, #tpu.memory_space<vmem>>, %arg10: memref<128x128xbf16, #tpu.memory_space<vmem>>, %arg11: memref<1x128xf32, #tpu.memory_space<vmem>>, %arg12: memref<16x128xbf16, #tpu.memory_space<vmem>>, %arg13: memref<16x64xbf16, #tpu.memory_space<vmem>>, %arg14: memref<16x32xbf16, #tpu.memory_space<vmem>>, %arg15: memref<128x128xbf16, #tpu.memory_space<vmem>>, %arg16: memref<128x128xbf16, #tpu.memory_space<vmem>>, %arg17: memref<128x128xbf16, #tpu.memory_space<vmem>>, %arg18: memref<1x128xf32, #tpu.memory_space<vmem>>, %arg19: memref<16x128xf32, #tpu.memory_space<vmem>>) attributes {dimension_semantics = [#tpu.dimension_semantics<parallel>], iteration_bounds = array<i64: 2>, scalar_prefetch = 0 : i64, scratch_operands = 0 : i64, tpu.core_type = #tpu.core_type<tc>, window_params = [{transform_indices = @transform_0, window_bounds = array<i64: 16, 128>}, {pipeline_mode = #tpu.pipeline_mode<synchronous>, transform_indices = @transform_1, window_bounds = array<i64: 128, 128>}, {pipeline_mode = #tpu.pipeline_mode<synchronous>, transform_indices = @transform_2, window_bounds = array<i64: 1, 128>}, {pipeline_mode = #tpu.pipeline_mode<synchronous>, transform_indices = @transform_3, window_bounds = array<i64: 128, 16>}, {pipeline_mode = #tpu.pipeline_mode<synchronous>, transform_indices = @transform_4, window_bounds = array<i64: 128, 1>}, {pipeline_mode = #tpu.pipeline_mode<synchronous>, transform_indices = @transform_5, window_bounds = array<i64: 64, 128>}, {pipeline_mode = #tpu.pipeline_mode<synchronous>, transform_indices = @transform_6, window_bounds = array<i64: 128, 128>}, {pipeline_mode = #tpu.pipeline_mode<synchronous>, transform_indices = @transform_7, window_bounds = array<i64: 1, 128>}, {pipeline_mode = #tpu.pipeline_mode<synchronous>, transform_indices = @transform_8, window_bounds = array<i64: 32, 64>}, {pipeline_mode = #tpu.pipeline_mode<synchronous>, transform_indices = @transform_9, window_bounds = array<i64: 128, 128>}, {pipeline_mode = #tpu.pipeline_mode<synchronous>, transform_indices = @transform_10, window_bounds = array<i64: 1, 128>}, {pipeline_mode = #tpu.pipeline_mode<synchronous>, transform_indices = @transform_11, window_bounds = array<i64: 16, 128>}, {pipeline_mode = #tpu.pipeline_mode<synchronous>, transform_indices = @transform_12, window_bounds = array<i64: 16, 64>}, {pipeline_mode = #tpu.pipeline_mode<synchronous>, transform_indices = @transform_13, window_bounds = array<i64: 16, 32>}, {pipeline_mode = #tpu.pipeline_mode<synchronous>, transform_indices = @transform_14, window_bounds = array<i64: 128, 128>}, {pipeline_mode = #tpu.pipeline_mode<synchronous>, transform_indices = @transform_15, window_bounds = array<i64: 128, 128>}, {pipeline_mode = #tpu.pipeline_mode<synchronous>, transform_indices = @transform_16, window_bounds = array<i64: 128, 128>}, {pipeline_mode = #tpu.pipeline_mode<synchronous>, transform_indices = @transform_17, window_bounds = array<i64: 1, 128>}, {transform_indices = @transform_18, window_bounds = array<i64: 16, 128>}]} {
    %c0 = arith.constant 0 : index
    %c0_0 = arith.constant 0 : index
    %0 = vector.load %arg1[%c0, %c0_0] : memref<16x128xbf16, #tpu.memory_space<vmem>>, vector<16x128xbf16>
    %c0_1 = arith.constant 0 : index
    %c0_2 = arith.constant 0 : index
    %1 = vector.load %arg2[%c0_1, %c0_2] : memref<128x128xbf16, #tpu.memory_space<vmem>>, vector<128x128xbf16>
    %cst = arith.constant dense<0.000000e+00> : vector<16x128xf32>
    %2 = tpu.matmul %0, %1, %cst {dimension_numbers = #tpu.dot_dimension_numbers<[1], [0], [0], [1], [0, 0, 1, 1], [], []>} : vector<16x128xbf16>, vector<128x128xbf16>, vector<16x128xf32> -> vector<16x128xf32>
    %c0_3 = arith.constant 0 : index
    %c0_4 = arith.constant 0 : index
    %3 = vector.load %arg3[%c0_3, %c0_4] : memref<1x128xf32, #tpu.memory_space<vmem>>, vector<1x128xf32>
    %4 = vector.broadcast %3 : vector<1x128xf32> to vector<16x128xf32>
    %5 = arith.addf %2, %4 : vector<16x128xf32>
    %c0_5 = arith.constant 0 : index
    %c0_6 = arith.constant 0 : index
    %6 = vector.load %arg4[%c0_5, %c0_6] : memref<128x16xbf16, #tpu.memory_space<vmem>>, vector<128x16xbf16>
    %7 = arith.truncf %5 : vector<16x128xf32> to vector<16x128xbf16>
    %cst_7 = arith.constant dense<0.000000e+00> : vector<128x128xf32>
    %8 = tpu.matmul %6, %7, %cst_7 {dimension_numbers = #tpu.dot_dimension_numbers<[1], [0], [0], [1], [0, 0, 1, 1], [], []>} : vector<128x16xbf16>, vector<16x128xbf16>, vector<128x128xf32> -> vector<128x128xf32>
    %c0_8 = arith.constant 0 : index
    %c0_9 = arith.constant 0 : index
    %9 = vector.load %arg5[%c0_8, %c0_9] : memref<128x1xf32, #tpu.memory_space<vmem>>, vector<128x1xf32>
    %10 = vector.broadcast %9 : vector<128x1xf32> to vector<128x128xf32>
    %11 = arith.addf %8, %10 : vector<128x128xf32>
    %c0_10 = arith.constant 0 : index
    %c0_11 = arith.constant 0 : index
    %12 = vector.load %arg6[%c0_10, %c0_11] : memref<64x128xbf16, #tpu.memory_space<vmem>>, vector<64x128xbf16>
    %13 = arith.truncf %11 : vector<128x128xf32> to vector<128x128xbf16>
    %cst_12 = arith.constant dense<0.000000e+00> : vector<64x128xf32>
    %14 = tpu.matmul %12, %13, %cst_12 {dimension_numbers = #tpu.dot_dimension_numbers<[1], [0], [0], [1], [0, 0, 1, 1], [], []>} : vector<64x128xbf16>, vector<128x128xbf16>, vector<64x128xf32> -> vector<64x128xf32>
    %15 = arith.truncf %14 : vector<64x128xf32> to vector<64x128xbf16>
    %c0_13 = arith.constant 0 : index
    %c0_14 = arith.constant 0 : index
    %16 = vector.load %arg7[%c0_13, %c0_14] : memref<128x128xbf16, #tpu.memory_space<vmem>>, vector<128x128xbf16>
    %cst_15 = arith.constant dense<0.000000e+00> : vector<64x128xf32>
    %17 = tpu.matmul %15, %16, %cst_15 {dimension_numbers = #tpu.dot_dimension_numbers<[1], [0], [0], [1], [0, 0, 1, 1], [], []>} : vector<64x128xbf16>, vector<128x128xbf16>, vector<64x128xf32> -> vector<64x128xf32>
    %c0_16 = arith.constant 0 : index
    %c0_17 = arith.constant 0 : index
    %18 = vector.load %arg8[%c0_16, %c0_17] : memref<1x128xf32, #tpu.memory_space<vmem>>, vector<1x128xf32>
    %19 = vector.broadcast %18 : vector<1x128xf32> to vector<64x128xf32>
    %20 = arith.addf %17, %19 : vector<64x128xf32>
    %cst_18 = arith.constant 0.000000e+00 : f32
    %21 = vector.broadcast %cst_18 : f32 to vector<64x128xf32>
    %22 = arith.maximumf %20, %21 : vector<64x128xf32>
    %c0_19 = arith.constant 0 : index
    %c0_20 = arith.constant 0 : index
    %23 = vector.load %arg9[%c0_19, %c0_20] : memref<32x64xbf16, #tpu.memory_space<vmem>>, vector<32x64xbf16>
    %24 = arith.truncf %22 : vector<64x128xf32> to vector<64x128xbf16>
    %cst_21 = arith.constant dense<0.000000e+00> : vector<32x128xf32>
    %25 = tpu.matmul %23, %24, %cst_21 {dimension_numbers = #tpu.dot_dimension_numbers<[1], [0], [0], [1], [0, 0, 1, 1], [], []>} : vector<32x64xbf16>, vector<64x128xbf16>, vector<32x128xf32> -> vector<32x128xf32>
    %26 = arith.truncf %25 : vector<32x128xf32> to vector<32x128xbf16>
    %c0_22 = arith.constant 0 : index
    %c0_23 = arith.constant 0 : index
    %27 = vector.load %arg10[%c0_22, %c0_23] : memref<128x128xbf16, #tpu.memory_space<vmem>>, vector<128x128xbf16>
    %cst_24 = arith.constant dense<0.000000e+00> : vector<32x128xf32>
    %28 = tpu.matmul %26, %27, %cst_24 {dimension_numbers = #tpu.dot_dimension_numbers<[1], [0], [0], [1], [0, 0, 1, 1], [], []>} : vector<32x128xbf16>, vector<128x128xbf16>, vector<32x128xf32> -> vector<32x128xf32>
    %c0_25 = arith.constant 0 : index
    %c0_26 = arith.constant 0 : index
    %29 = vector.load %arg11[%c0_25, %c0_26] : memref<1x128xf32, #tpu.memory_space<vmem>>, vector<1x128xf32>
    %30 = vector.broadcast %29 : vector<1x128xf32> to vector<32x128xf32>
    %31 = arith.addf %28, %30 : vector<32x128xf32>
    %cst_27 = arith.constant 0.000000e+00 : f32
    %32 = vector.broadcast %cst_27 : f32 to vector<32x128xf32>
    %33 = arith.maximumf %31, %32 : vector<32x128xf32>
    %c0_28 = arith.constant 0 : index
    %c0_29 = arith.constant 0 : index
    %34 = vector.load %arg12[%c0_28, %c0_29] : memref<16x128xbf16, #tpu.memory_space<vmem>>, vector<16x128xbf16>
    %35 = arith.truncf %11 : vector<128x128xf32> to vector<128x128xbf16>
    %cst_30 = arith.constant dense<0.000000e+00> : vector<16x128xf32>
    %36 = tpu.matmul %34, %35, %cst_30 {dimension_numbers = #tpu.dot_dimension_numbers<[1], [0], [0], [1], [0, 0, 1, 1], [], []>} : vector<16x128xbf16>, vector<128x128xbf16>, vector<16x128xf32> -> vector<16x128xf32>
    %c0_31 = arith.constant 0 : index
    %c0_32 = arith.constant 0 : index
    %37 = vector.load %arg13[%c0_31, %c0_32] : memref<16x64xbf16, #tpu.memory_space<vmem>>, vector<16x64xbf16>
    %38 = arith.truncf %22 : vector<64x128xf32> to vector<64x128xbf16>
    %cst_33 = arith.constant dense<0.000000e+00> : vector<16x128xf32>
    %39 = tpu.matmul %37, %38, %cst_33 {dimension_numbers = #tpu.dot_dimension_numbers<[1], [0], [0], [1], [0, 0, 1, 1], [], []>} : vector<16x64xbf16>, vector<64x128xbf16>, vector<16x128xf32> -> vector<16x128xf32>
    %c0_34 = arith.constant 0 : index
    %c0_35 = arith.constant 0 : index
    %40 = vector.load %arg14[%c0_34, %c0_35] : memref<16x32xbf16, #tpu.memory_space<vmem>>, vector<16x32xbf16>
    %41 = arith.truncf %33 : vector<32x128xf32> to vector<32x128xbf16>
    %cst_36 = arith.constant dense<0.000000e+00> : vector<16x128xf32>
    %42 = tpu.matmul %40, %41, %cst_36 {dimension_numbers = #tpu.dot_dimension_numbers<[1], [0], [0], [1], [0, 0, 1, 1], [], []>} : vector<16x32xbf16>, vector<32x128xbf16>, vector<16x128xf32> -> vector<16x128xf32>
    %43 = arith.truncf %36 : vector<16x128xf32> to vector<16x128xbf16>
    %c0_37 = arith.constant 0 : index
    %c0_38 = arith.constant 0 : index
    %44 = vector.load %arg15[%c0_37, %c0_38] : memref<128x128xbf16, #tpu.memory_space<vmem>>, vector<128x128xbf16>
    %cst_39 = arith.constant dense<0.000000e+00> : vector<16x128xf32>
    %45 = tpu.matmul %43, %44, %cst_39 {dimension_numbers = #tpu.dot_dimension_numbers<[1], [0], [0], [1], [0, 0, 1, 1], [], []>} : vector<16x128xbf16>, vector<128x128xbf16>, vector<16x128xf32> -> vector<16x128xf32>
    %46 = arith.truncf %39 : vector<16x128xf32> to vector<16x128xbf16>
    %c0_40 = arith.constant 0 : index
    %c0_41 = arith.constant 0 : index
    %47 = vector.load %arg16[%c0_40, %c0_41] : memref<128x128xbf16, #tpu.memory_space<vmem>>, vector<128x128xbf16>
    %cst_42 = arith.constant dense<0.000000e+00> : vector<16x128xf32>
    %48 = tpu.matmul %46, %47, %cst_42 {dimension_numbers = #tpu.dot_dimension_numbers<[1], [0], [0], [1], [0, 0, 1, 1], [], []>} : vector<16x128xbf16>, vector<128x128xbf16>, vector<16x128xf32> -> vector<16x128xf32>
    %49 = arith.addf %45, %48 : vector<16x128xf32>
    %50 = arith.truncf %42 : vector<16x128xf32> to vector<16x128xbf16>
    %c0_43 = arith.constant 0 : index
    %c0_44 = arith.constant 0 : index
    %51 = vector.load %arg17[%c0_43, %c0_44] : memref<128x128xbf16, #tpu.memory_space<vmem>>, vector<128x128xbf16>
    %cst_45 = arith.constant dense<0.000000e+00> : vector<16x128xf32>
    %52 = tpu.matmul %50, %51, %cst_45 {dimension_numbers = #tpu.dot_dimension_numbers<[1], [0], [0], [1], [0, 0, 1, 1], [], []>} : vector<16x128xbf16>, vector<128x128xbf16>, vector<16x128xf32> -> vector<16x128xf32>
    %53 = arith.addf %49, %52 : vector<16x128xf32>
    %c0_46 = arith.constant 0 : index
    %c0_47 = arith.constant 0 : index
    %54 = vector.load %arg18[%c0_46, %c0_47] : memref<1x128xf32, #tpu.memory_space<vmem>>, vector<1x128xf32>
    %55 = vector.broadcast %54 : vector<1x128xf32> to vector<16x128xf32>
    %56 = arith.addf %53, %55 : vector<16x128xf32>
    %c0_48 = arith.constant 0 : index
    %c0_49 = arith.constant 0 : index
    %57 = vector.load %arg19[%c0_48, %c0_49] : memref<16x128xf32, #tpu.memory_space<vmem>>, vector<16x128xf32>
    tpu.vector_store %arg19[%c0_48, %c0_49], %56 {strides = array<i32>} : memref<16x128xf32, #tpu.memory_space<vmem>>, vector<16x128xf32>,
    return
  }
  func.func @transform_0(%arg0: i32) -> (i32, i32) {
    %c0_i32 = arith.constant 0 : i32
    %c0_i32_0 = arith.constant 0 : i32
    return %arg0, %c0_i32 : i32, i32
  }
  func.func @transform_1(%arg0: i32) -> (i32, i32) {
    %c0_i32 = arith.constant 0 : i32
    %c0_i32_0 = arith.constant 0 : i32
    %c0_i32_1 = arith.constant 0 : i32
    return %c0_i32, %c0_i32_0 : i32, i32
  }
  func.func @transform_2(%arg0: i32) -> (i32, i32) {
    %c0_i32 = arith.constant 0 : i32
    %c0_i32_0 = arith.constant 0 : i32
    %c0_i32_1 = arith.constant 0 : i32
    return %c0_i32, %c0_i32_0 : i32, i32
  }
  func.func @transform_3(%arg0: i32) -> (i32, i32) {
    %c0_i32 = arith.constant 0 : i32
    %c0_i32_0 = arith.constant 0 : i32
    %c0_i32_1 = arith.constant 0 : i32
    return %c0_i32, %c0_i32_0 : i32, i32
  }
  func.func @transform_4(%arg0: i32) -> (i32, i32) {
    %c0_i32 = arith.constant 0 : i32
    %c0_i32_0 = arith.constant 0 : i32
    %c0_i32_1 = arith.constant 0 : i32
    return %c0_i32, %c0_i32_0 : i32, i32
  }
  func.func @transform_5(%arg0: i32) -> (i32, i32) {
    %c0_i32 = arith.constant 0 : i32
    %c0_i32_0 = arith.constant 0 : i32
    %c0_i32_1 = arith.constant 0 : i32
    return %c0_i32, %c0_i32_0 : i32, i32
  }
  func.func @transform_6(%arg0: i32) -> (i32, i32) {
    %c0_i32 = arith.constant 0 : i32
    %c0_i32_0 = arith.constant 0 : i32
    %c0_i32_1 = arith.constant 0 : i32
    return %c0_i32, %c0_i32_0 : i32, i32
  }
  func.func @transform_7(%arg0: i32) -> (i32, i32) {
    %c0_i32 = arith.constant 0 : i32
    %c0_i32_0 = arith.constant 0 : i32
    %c0_i32_1 = arith.constant 0 : i32
    return %c0_i32, %c0_i32_0 : i32, i32
  }
  func.func @transform_8(%arg0: i32) -> (i32, i32) {
    %c0_i32 = arith.constant 0 : i32
    %c0_i32_0 = arith.constant 0 : i32
    %c0_i32_1 = arith.constant 0 : i32
    return %c0_i32, %c0_i32_0 : i32, i32
  }
  func.func @transform_9(%arg0: i32) -> (i32, i32) {
    %c0_i32 = arith.constant 0 : i32
    %c0_i32_0 = arith.constant 0 : i32
    %c0_i32_1 = arith.constant 0 : i32
    return %c0_i32, %c0_i32_0 : i32, i32
  }
  func.func @transform_10(%arg0: i32) -> (i32, i32) {
    %c0_i32 = arith.constant 0 : i32
    %c0_i32_0 = arith.constant 0 : i32
    %c0_i32_1 = arith.constant 0 : i32
    return %c0_i32, %c0_i32_0 : i32, i32
  }
  func.func @transform_11(%arg0: i32) -> (i32, i32) {
    %c0_i32 = arith.constant 0 : i32
    %c0_i32_0 = arith.constant 0 : i32
    %c0_i32_1 = arith.constant 0 : i32
    return %c0_i32, %c0_i32_0 : i32, i32
  }
  func.func @transform_12(%arg0: i32) -> (i32, i32) {
    %c0_i32 = arith.constant 0 : i32
    %c0_i32_0 = arith.constant 0 : i32
    %c0_i32_1 = arith.constant 0 : i32
    return %c0_i32, %c0_i32_0 : i32, i32
  }
  func.func @transform_13(%arg0: i32) -> (i32, i32) {
    %c0_i32 = arith.constant 0 : i32
    %c0_i32_0 = arith.constant 0 : i32
    %c0_i32_1 = arith.constant 0 : i32
    return %c0_i32, %c0_i32_0 : i32, i32
  }
  func.func @transform_14(%arg0: i32) -> (i32, i32) {
    %c0_i32 = arith.constant 0 : i32
    %c0_i32_0 = arith.constant 0 : i32
    %c0_i32_1 = arith.constant 0 : i32
    return %c0_i32, %c0_i32_0 : i32, i32
  }
  func.func @transform_15(%arg0: i32) -> (i32, i32) {
    %c0_i32 = arith.constant 0 : i32
    %c0_i32_0 = arith.constant 0 : i32
    %c0_i32_1 = arith.constant 0 : i32
    return %c0_i32, %c0_i32_0 : i32, i32
  }
  func.func @transform_16(%arg0: i32) -> (i32, i32) {
    %c0_i32 = arith.constant 0 : i32
    %c0_i32_0 = arith.constant 0 : i32
    %c0_i32_1 = arith.constant 0 : i32
    return %c0_i32, %c0_i32_0 : i32, i32
  }
  func.func @transform_17(%arg0: i32) -> (i32, i32) {
    %c0_i32 = arith.constant 0 : i32
    %c0_i32_0 = arith.constant 0 : i32
    %c0_i32_1 = arith.constant 0 : i32
    return %c0_i32, %c0_i32_0 : i32, i32
  }
  func.func @transform_18(%arg0: i32) -> (i32, i32) {
    %c0_i32 = arith.constant 0 : i32
    %c0_i32_0 = arith.constant 0 : i32
    return %arg0, %c0_i32 : i32, i32
  }
}

</mosaic_0001>

<bundles_post_ra>
// kernel: tpu_custom_call.1
= control target key start
LH: loop header
LB: loop body
LE: loop exit
PB: predicated region body
PF: predicated region fallthrough
CT: control target
= control target key end

     0   :  { %s4150_s0 = inlined_call_operand.hbm [shape: bf16[32,128], index: 0, kind: input, shape index: {}]   ;;  %s4151_s1 = inlined_call_operand.vmem [shape: bf16[128,128], index: 1, kind: input, shape index: {}]   ;;  %s4152_s2 = inlined_call_operand.hbm [shape: f32[1,128], index: 2, kind: input, shape index: {}]   ;;  %s4153_s3 = inlined_call_operand.vmem [shape: bf16[128,16], index: 3, kind: input, shape index: {}]   ;;  %s4154_s4 = inlined_call_operand.vmem [shape: f32[128,1], index: 4, kind: input, shape index: {}]   ;;  %s4155_s5 = inlined_call_operand.hbm [shape: bf16[64,128], index: 5, kind: input, shape index: {}]   ;;  %s4156_s6 = inlined_call_operand.vmem [shape: bf16[128,128], index: 6, kind: input, shape index: {}]   ;;  %s4157_s7 = inlined_call_operand.hbm [shape: f32[1,128], index: 7, kind: input, shape index: {}]   ;;  %s4158_s8 = inlined_call_operand.hbm [shape: bf16[32,64], index: 8, kind: input, shape index: {}]   ;;  %s4159_s9 = inlined_call_operand.vmem [shape: bf16[128,128], index: 9, kind: input, shape index: {}]   ;;  %s4160_s10 = inlined_call_operand.hbm [shape: f32[1,128], index: 10, kind: input, shape index: {}]   ;;  %s4161_s11 = inlined_call_operand.hbm [shape: bf16[16,128], index: 11, kind: input, shape index: {}]   ;;  %s4162_s12 = inlined_call_operand.hbm [shape: bf16[16,64], index: 12, kind: input, shape index: {}]   ;;  %s4163_s13 = inlined_call_operand.hbm [shape: bf16[16,32], index: 13, kind: input, shape index: {}]   ;;  %s4164_s14 = inlined_call_operand.hbm [shape: bf16[128,128], index: 14, kind: input, shape index: {}]   ;;  %s4165_s15 = inlined_call_operand.vmem [shape: bf16[128,128], index: 15, kind: input, shape index: {}]   ;;  %s4166_s16 = inlined_call_operand.hbm [shape: bf16[128,128], index: 16, kind: input, shape index: {}]   ;;  %s4167_s17 = inlined_call_operand.vmem [shape: f32[1,128], index: 17, kind: input, shape index: {}]   ;;  %s4168_s18 = inlined_call_operand.hbm [shape: f32[32,128], index: 18, kind: output, shape index: {}]  }
   0x1   :  { %4184 = sst [smem:[#allocation28_spill]] %s4150_s0 }
   0x2   :  { %4185 = sst [smem:[#allocation29_spill]] %s4151_s1 }
   0x3   :  { %4186 = sst [smem:[#allocation30_spill]] %s4152_s2 }
   0x4   :  { %4187 = sst [smem:[#allocation31_spill]] %s4153_s3 }
   0x5   :  { %4188 = sst [smem:[#allocation32_spill]] %s4154_s4 }
   0x6   :  { %4189 = sst [smem:[#allocation33_spill]] %s4155_s5 }
   0x7   :  { %4190 = sst [smem:[#allocation34_spill]] %s4156_s6 }
   0x8   :  { %4191 = sst [smem:[#allocation35_spill]] %s4157_s7 }
   0x9   :  { %4192 = sst [smem:[#allocation36_spill]] %s4158_s8 }
   0xa   :  { %4193 = sst [smem:[#allocation37_spill]] %s4159_s9 }
   0xb   :  { %4194 = sst [smem:[#allocation38_spill]] %s4160_s10 }
   0xc   :  { %4195 = sst [smem:[#allocation39_spill]] %s4165_s15 }
   0xd   :  { %4196 = sst [smem:[#allocation40_spill]] %s4167_s17 }
   0xe   :  { %4197 = sst [smem:[#allocation41_spill]] %s4168_s18 }
   0xf   :  { %23 = vsyncpa [#allocation3], 0 }
  0x10   :  { %25 = vsyncpa [#allocation3 + $0x1], 0 }
  0x11   :  { %26 = vsyncpa [#allocation6], 0 }
  0x12   :  { %27 = vsyncpa [#allocation9], 0 }
  0x13   :  { %28 = vsyncpa [#allocation12], 0 }
  0x14   :  { %29 = vsyncpa [#allocation15], 0 }
  0x15   :  { %30 = vsyncpa [#allocation18], 0 }
  0x16   :  { %31 = vsyncpa [#allocation4], 0 }
  0x17   :  { %33 = vsyncpa [#allocation4 + $0x1], 0  ;;  %s3423_s27 = smov 0   ;;  %s3425_s28 = smov 0  }
  0x18   :  { %s3427_s29 = smov 0   ;;  %s3429_s30 = smov 0  }
  0x19 LB: > { %s3309_s0 = smov [#allocation5]   ;;  %s3444_s1 = sadd.s32 4294967295, %s3307_s30   ;;  %s3307_s30 = sphi %s3429_s30, %s4240_s30   ;;  %s3303_s29 = sphi %s3427_s29, %s4239_s29   ;;  %s3299_s28 = sphi %s3425_s28, %s4238_s28   ;;  %s3295_s27 = sphi %s3423_s27, %s4237_s27  }
  0x1a   : > { %s469_s19 = sshll.u32 %s3309_s0, 4  ;;  %p2252_p0 = scmp.ge.s32.totalorder %s3307_s30, 1  ;;  %s3449_s19 = int_to_ptr.vmem [resolvable:$true] %s469_s19 }
  0x1b   : > { %p4178_p1 = scmp.eq.s32.totalorder %s3444_s1, 0  ;;  %p453_p2 = scmp.lt.s32.totalorder %s3307_s30, 3 }
  0x1c   : > { %s3310_s21 = smov [#allocation8]   ;;  %s3311_s2 = smov [#allocation11]  }
  0x1d   : > { %p3451_p3 = pnand %p2252_p0, %p453_p2  ;;  %s502_s22 = sshll.u32 %s3310_s21, 4  ;;  %s3458_s22 = int_to_ptr.vmem [resolvable:$true] %s502_s22 }
  0x1e   : > { %s529_s23 = sshll.u32 %s3311_s2, 4  ;;  %s4200_s0 = sld [smem:[#allocation30_spill]]  ;;  %s3466_s23 = int_to_ptr.vmem [resolvable:$true] %s529_s23 }
  0x1f   : > { %s4198_s20 = scalar_select %p3451_p3, 1, 0 }
  0x20   : > { %p2733_p5 = pneg %p3451_p3 }
  0x22   : > { %p3462_p6 = pnand %p2733_p5, %p4178_p1 }
  0x24   : > { %s2911_s18 = scalar_lea.hbm %s4200_s0, 16  ;;  %p3476_p8 = pneg %p3462_p6 }
  0x25   : > { %p2912_p7 = scmp.ne.s32.totalorder %s4200_s0, %s2911_s18  ;;  %p2918_p11 = scmp.lt.u32.totalorder %s2911_s18, %s4200_s0 }
  0x27   : > { %p2914_p9 = pnand %p3476_p8, %p2912_p7 }
  0x29   : > { %p2915_p10 = pneg %p2914_p9 }
  0x2b   : > { %p2920_p12 = pnand %p2918_p11, %p2915_p10 }
  0x2d   : > { %2923 = shalt.err (!%p2920_p12)
}
  0x2e   : > { %s2924_s15 = scalar_lea.vmem %s3449_s19, 16  ;;  %s2931_s17 = scalar_lea.vmem %s3449_s19, 32 }
  0x2f   : > { %p2925_p13 = scmp.ne.s32.totalorder %s3449_s19, %s2924_s15  ;;  %p2932_p5 = scmp.lt.s32.totalorder %s3449_s19, %s3449_s19 }
  0x30   : > { %p2933_p7 = scmp.lt.s32.totalorder %s2931_s17, %s2924_s15 }
  0x31   : > { %p2927_p0 = pnand %p2925_p13, %p3476_p8 }
  0x32   : > { %p2934_p9 = por %p2933_p7, %p2932_p5 }
  0x33   : > { %p2928_p2 = pneg %p2927_p0 }
  0x35   : > { %p2935_p4 = pnand %p2934_p9, %p2928_p2 }
  0x37   : > { %2938 = shalt.err (!%p2935_p4)
}
  0x38   : > { %2736 = dma.hbm_to_vmem [thread:$0]  (!%p3462_p6), %s4200_s0, 16, %s3449_s19, [#allocation6]  }
  0x39   : > { %s4202_s7 = sld [smem:[#allocation35_spill]] }
  0x3f   : > { %s2939_s2 = scalar_lea.hbm %s4202_s7, 16 }
  0x40   : > { %p2940_p10 = scmp.ne.s32.totalorder %s4202_s7, %s2939_s2  ;;  %p2946_p4 = scmp.lt.u32.totalorder %s2939_s2, %s4202_s7 }
  0x42   : > { %p2942_p11 = pnand %p2940_p10, %p3476_p8 }
  0x44   : > { %p2943_p12 = pneg %p2942_p11 }
  0x46   : > { %p2948_p13 = pnand %p2946_p4, %p2943_p12 }
  0x48   : > { %2951 = shalt.err (!%p2948_p13)
}
  0x49   : > { %s2952_s19 = scalar_lea.vmem %s3458_s22, 16  ;;  %s2959_s4 = scalar_lea.vmem %s3458_s22, 32 }
  0x4a   : > { %p2953_p0 = scmp.ne.s32.totalorder %s3458_s22, %s2952_s19  ;;  %p2960_p7 = scmp.lt.s32.totalorder %s3458_s22, %s3458_s22 }
  0x4b   : > { %p2961_p9 = scmp.lt.s32.totalorder %s2959_s4, %s2952_s19 }
  0x4c   : > { %p2955_p2 = pnand %p2953_p0, %p3476_p8 }
  0x4d   : > { %p2962_p10 = por %p2961_p9, %p2960_p7 }
  0x4e   : > { %p2956_p5 = pneg %p2955_p2 }
  0x50   : > { %p2963_p11 = pnand %p2962_p10, %p2956_p5 }
  0x52   : > { %2966 = shalt.err (!%p2963_p11)
}
  0x53   : > { %2742 = dma.hbm_to_vmem [thread:$0]  (!%p3462_p6), %s4202_s7, 16, %s3458_s22, [#allocation9]  }
  0x54   : > { %s4203_s10 = sld [smem:[#allocation38_spill]] }
  0x5a   : > { %s2967_s26 = scalar_lea.hbm %s4203_s10, 16 }
  0x5b   : > { %p2968_p12 = scmp.ne.s32.totalorder %s4203_s10, %s2967_s26  ;;  %p2974_p0 = scmp.lt.u32.totalorder %s2967_s26, %s4203_s10 }
  0x5d   : > { %p2970_p4 = pnand %p2968_p12, %p3476_p8 }
  0x5f   : > { %p2971_p13 = pneg %p2970_p4 }
  0x61   : > { %p2976_p2 = pnand %p2974_p0, %p2971_p13 }
  0x63   : > { %2979 = shalt.err (!%p2976_p2)
}
  0x64   : > { %s2980_s22 = scalar_lea.vmem %s3466_s23, 16  ;;  %s2987_s4 = scalar_lea.vmem %s3466_s23, 32 }
  0x65   : > { %p2981_p5 = scmp.ne.s32.totalorder %s3466_s23, %s2980_s22  ;;  %p2988_p10 = scmp.lt.s32.totalorder %s3466_s23, %s3466_s23 }
  0x66   : > { %p2989_p11 = scmp.lt.s32.totalorder %s2987_s4, %s2980_s22 }
  0x67   : > { %p2983_p7 = pnand %p2981_p5, %p3476_p8 }
  0x68   : > { %p2990_p12 = por %p2989_p11, %p2988_p10 }
  0x69   : > { %p2984_p9 = pneg %p2983_p7 }
  0x6b   : > { %p2991_p4 = pnand %p2990_p12, %p2984_p9 }
  0x6d   : > { %2994 = shalt.err (!%p2991_p4)
}
  0x6e   : > { %2748 = dma.hbm_to_vmem [thread:$0]  (!%p3462_p6), %s4203_s10, 16, %s3466_s23, [#allocation12]  }
  0x6f   : > { %s3312_s18 = smov [#allocation14]   ;;  %s3313_s26 = smov [#allocation17]  }
  0x70   : > { %s552_s25 = sshll.u32 %s3312_s18, 4  ;;  %s578_s2 = sshll.u32 %s3313_s26, 4  ;;  %s553_s25 = int_to_ptr.vmem [resolvable:$true] %s552_s25  ;;  %s579_s2 = int_to_ptr.vmem [resolvable:$true] %s578_s2 }
  0x71   : > { %s2995_s19 = scalar_lea.hbm %s4162_s12, 128 }
  0x72   : > { %p2996_p13 = scmp.ne.s32.totalorder %s4162_s12, %s2995_s19  ;;  %p3002_p5 = scmp.lt.u32.totalorder %s2995_s19, %s4162_s12 }
  0x74   : > { %p2998_p0 = pnand %p2996_p13, %p3476_p8 }
  0x76   : > { %p2999_p2 = pneg %p2998_p0 }
  0x78   : > { %p3004_p7 = pnand %p3002_p5, %p2999_p2 }
  0x7a   : > { %3007 = shalt.err (!%p3004_p7)
}
  0x7b   : > { %s3008_s23 = scalar_lea.vmem %s553_s25, 128  ;;  %p3016_p12 = scmp.lt.s32.totalorder %s553_s25, %s553_s25 }
  0x7c   : > { %p3009_p9 = scmp.ne.s32.totalorder %s553_s25, %s3008_s23  ;;  %p3017_p4 = scmp.lt.s32.totalorder %s3008_s23, %s3008_s23 }
  0x7e   : > { %p3011_p10 = pnand %p3009_p9, %p3476_p8  ;;  %p3018_p1 = por %p3017_p4, %p3016_p12 }
  0x80   : > { %p3012_p11 = pneg %p3011_p10 }
  0x82   : > { %p3019_p3 = pnand %p3018_p1, %p3012_p11 }
  0x84   : > { %3022 = shalt.err (!%p3019_p3)
}
  0x85   : > { %s4180_s9 = smov 64   ;;  %s4181_s18 = smov 4  }
  0x86   : > { %2754 = dma.hbm_to_vmem [thread:$0]  (!%p3462_p6), %s4162_s12, 128, %s553_s25, [#allocation15], %s4180_s9, %s4180_s9, %s4181_s18  }
  0x87   : > { %s3023_s19 = scalar_lea.hbm %s4164_s14, 1024 }
  0x88   : > { %p3024_p1 = scmp.ne.s32.totalorder %s4164_s14, %s3023_s19  ;;  %p3030_p0 = scmp.lt.u32.totalorder %s3023_s19, %s4164_s14 }
  0x8a   : > { %p3026_p3 = pnand %p3024_p1, %p3476_p8 }
  0x8c   : > { %p3027_p13 = pneg %p3026_p3 }
  0x8e   : > { %p3032_p2 = pnand %p3030_p0, %p3027_p13 }
  0x90   : > { %3035 = shalt.err (!%p3032_p2)
}
  0x91   : > { %s3036_s0 = scalar_lea.vmem %s579_s2, 1024  ;;  %p3044_p10 = scmp.lt.s32.totalorder %s579_s2, %s579_s2 }
  0x92   : > { %p3037_p5 = scmp.ne.s32.totalorder %s579_s2, %s3036_s0  ;;  %p3045_p11 = scmp.lt.s32.totalorder %s3036_s0, %s3036_s0 }
  0x94   : > { %p3039_p7 = pnand %p3037_p5, %p3476_p8  ;;  %p3046_p12 = por %p3045_p11, %p3044_p10 }
  0x96   : > { %p3040_p9 = pneg %p3039_p7 }
  0x98   : > { %p3047_p4 = pnand %p3046_p12, %p3040_p9 }
  0x9a   : > { %3050 = shalt.err (!%p3047_p4)
}
  0x9b   : > { %2760 = dma.hbm_to_vmem [thread:$0]  (!%p3462_p6), %s4164_s14, 1024, %s579_s2, [#allocation18], %s4180_s9, %s4180_s9, %s4181_s18  }
  0x9c   : > { %s3316_s15 = smov [#allocation7]   ;;  %s3317_s19 = smov [#allocation10]  }
  0x9d   : > { %s485_s17 = sshll.u32 %s3316_s15, 4  ;;  %s512_s22 = sshll.u32 %s3317_s19, 4  ;;  %s486_s17 = int_to_ptr.vmem [resolvable:$true] %s485_s17  ;;  %s513_s22 = int_to_ptr.vmem [resolvable:$true] %s512_s22 }
  0x9e   : > { %s4204_s5 = sld [smem:[#allocation33_spill]] }
  0xa4   : > { %s3051_s23 = scalar_lea.hbm %s4204_s5, 512 }
  0xa5   : > { %p3052_p1 = scmp.ne.s32.totalorder %s4204_s5, %s3051_s23  ;;  %p3058_p0 = scmp.lt.u32.totalorder %s3051_s23, %s4204_s5 }
  0xa7   : > { %p3054_p3 = pnand %p3052_p1, %p3476_p8 }
  0xa9   : > { %p3055_p13 = pneg %p3054_p3 }
  0xab   : > { %p3060_p2 = pnand %p3058_p0, %p3055_p13 }
  0xad   : > { %3063 = shalt.err (!%p3060_p2)
}
  0xae   : > { %s3064_s2 = scalar_lea.vmem %s486_s17, 512  ;;  %p3072_p10 = scmp.lt.s32.totalorder %s486_s17, %s486_s17 }
  0xaf   : > { %p3065_p5 = scmp.ne.s32.totalorder %s486_s17, %s3064_s2  ;;  %p3073_p11 = scmp.lt.s32.totalorder %s3064_s2, %s3064_s2 }
  0xb1   : > { %p3067_p7 = pnand %p3065_p5, %p3476_p8  ;;  %p3074_p12 = por %p3073_p11, %p3072_p10 }
  0xb3   : > { %p3068_p9 = pneg %p3067_p7 }
  0xb5   : > { %p3075_p4 = pnand %p3074_p12, %p3068_p9 }
  0xb7   : > { %3078 = shalt.err (!%p3075_p4)
}
  0xb8   : > { %2739 = dma.hbm_to_vmem [thread:$0]  (!%p3462_p6), %s4204_s5, 512, %s486_s17, [#allocation6], %s4180_s9, %s4180_s9, %s4181_s18  }
  0xb9   : > { %s4205_s8 = sld [smem:[#allocation36_spill]] }
  0xbf   : > { %s3079_s19 = scalar_lea.hbm %s4205_s8, 256 }
  0xc0   : > { %p3080_p1 = scmp.ne.s32.totalorder %s4205_s8, %s3079_s19  ;;  %p3086_p0 = scmp.lt.u32.totalorder %s3079_s19, %s4205_s8 }
  0xc2   : > { %p3082_p3 = pnand %p3080_p1, %p3476_p8 }
  0xc4   : > { %p3083_p13 = pneg %p3082_p3 }
  0xc6   : > { %p3088_p2 = pnand %p3086_p0, %p3083_p13 }
  0xc8   : > { %3091 = shalt.err (!%p3088_p2)
}
  0xc9   : > { %s3092_s25 = scalar_lea.vmem %s513_s22, 256  ;;  %p3100_p10 = scmp.lt.s32.totalorder %s513_s22, %s513_s22 }
  0xca   : > { %p3093_p5 = scmp.ne.s32.totalorder %s513_s22, %s3092_s25  ;;  %p3101_p11 = scmp.lt.s32.totalorder %s3092_s25, %s3092_s25 }
  0xcc   : > { %p3095_p7 = pnand %p3093_p5, %p3476_p8  ;;  %p3102_p12 = por %p3101_p11, %p3100_p10 }
  0xce   : > { %p3096_p9 = pneg %p3095_p7 }
  0xd0   : > { %p3103_p4 = pnand %p3102_p12, %p3096_p9 }
  0xd2   : > { %3106 = shalt.err (!%p3103_p4)
}
  0xd3   : > { %2745 = dma.hbm_to_vmem [thread:$0]  (!%p3462_p6), %s4205_s8, 256, %s513_s22, [#allocation9], %s4180_s9, %s4180_s9, %s4181_s18  }
  0xd4   : > { %s3318_s7 = smov [#allocation13]   ;;  %s3319_s26 = smov [#allocation16]  }
  0xd5   : > { %s539_s10 = sshll.u32 %s3318_s7, 4  ;;  %s565_s15 = sshll.u32 %s3319_s26, 4  ;;  %s540_s10 = int_to_ptr.vmem [resolvable:$true] %s539_s10  ;;  %s566_s15 = int_to_ptr.vmem [resolvable:$true] %s565_s15 }
  0xd6   : > { %s3107_s6 = scalar_lea.hbm %s4161_s11, 128 }
  0xd7   : > { %p3108_p1 = scmp.ne.s32.totalorder %s4161_s11, %s3107_s6  ;;  %p3114_p0 = scmp.lt.u32.totalorder %s3107_s6, %s4161_s11 }
  0xd9   : > { %p3110_p3 = pnand %p3108_p1, %p3476_p8 }
  0xdb   : > { %p3111_p13 = pneg %p3110_p3 }
  0xdd   : > { %p3116_p2 = pnand %p3114_p0, %p3111_p13 }
  0xdf   : > { %3119 = shalt.err (!%p3116_p2)
}
  0xe0   : > { %s3120_s22 = scalar_lea.vmem %s540_s10, 128  ;;  %p3128_p10 = scmp.lt.s32.totalorder %s540_s10, %s540_s10 }
  0xe1   : > { %p3121_p5 = scmp.ne.s32.totalorder %s540_s10, %s3120_s22  ;;  %p3129_p11 = scmp.lt.s32.totalorder %s3120_s22, %s3120_s22 }
  0xe3   : > { %p3123_p7 = pnand %p3121_p5, %p3476_p8  ;;  %p3130_p12 = por %p3129_p11, %p3128_p10 }
  0xe5   : > { %p3124_p9 = pneg %p3123_p7 }
  0xe7   : > { %p3131_p4 = pnand %p3130_p12, %p3124_p9 }
  0xe9   : > { %3134 = shalt.err (!%p3131_p4)
}
  0xea   : > { %2751 = dma.hbm_to_vmem [thread:$0]  (!%p3462_p6), %s4161_s11, 128, %s540_s10, [#allocation12], %s4180_s9, %s4180_s9, %s4181_s18  }
  0xeb   : > { %s3135_s4 = scalar_lea.hbm %s4163_s13, 128 }
  0xec   : > { %p3136_p1 = scmp.ne.s32.totalorder %s4163_s13, %s3135_s4  ;;  %p3142_p0 = scmp.lt.u32.totalorder %s3135_s4, %s4163_s13 }
  0xee   : > { %p3138_p3 = pnand %p3136_p1, %p3476_p8 }
  0xf0   : > { %p3139_p13 = pneg %p3138_p3 }
  0xf2   : > { %p3144_p2 = pnand %p3142_p0, %p3139_p13 }
  0xf4   : > { %3147 = shalt.err (!%p3144_p2)
}
  0xf5   : > { %s3148_s17 = scalar_lea.vmem %s566_s15, 128  ;;  %p3156_p10 = scmp.lt.s32.totalorder %s566_s15, %s566_s15 }
  0xf6   : > { %p3149_p5 = scmp.ne.s32.totalorder %s566_s15, %s3148_s17  ;;  %p3157_p11 = scmp.lt.s32.totalorder %s3148_s17, %s3148_s17 }
  0xf8   : > { %p3151_p7 = pnand %p3149_p5, %p3476_p8  ;;  %p3158_p12 = por %p3157_p11, %p3156_p10 }
  0xfa   : > { %p3152_p9 = pneg %p3151_p7 }
  0xfc   : > { %p3159_p4 = pnand %p3158_p12, %p3152_p9 }
  0xfe   : > { %3162 = shalt.err (!%p3159_p4)
}
  0xff   : > { %2757 = dma.hbm_to_vmem [thread:$0]  (!%p3462_p6), %s4163_s13, 128, %s566_s15, [#allocation15], %s4180_s9, %s4180_s9, %s4181_s18  }
 0x100   : > { %s3320_s2 = smov [#allocation19]   ;;  %s3163_s4 = scalar_lea.hbm %s4166_s16, 1024 }
 0x101   : > { %s594_s7 = sshll.u32 %s3320_s2, 4  ;;  %p3164_p1 = scmp.ne.s32.totalorder %s4166_s16, %s3163_s4  ;;  %s595_s7 = int_to_ptr.vmem [resolvable:$true] %s594_s7 }
 0x102   : > { %p3170_p0 = scmp.lt.u32.totalorder %s3163_s4, %s4166_s16 }
 0x103   : > { %p3166_p3 = pnand %p3164_p1, %p3476_p8 }
 0x105   : > { %p3167_p13 = pneg %p3166_p3 }
 0x107   : > { %p3172_p2 = pnand %p3170_p0, %p3167_p13 }
 0x109   : > { %3175 = shalt.err (!%p3172_p2)
}
 0x10a   : > { %s3176_s15 = scalar_lea.vmem %s595_s7, 1024  ;;  %p3184_p10 = scmp.lt.s32.totalorder %s595_s7, %s595_s7 }
 0x10b   : > { %p3177_p5 = scmp.ne.s32.totalorder %s595_s7, %s3176_s15  ;;  %p3185_p11 = scmp.lt.s32.totalorder %s3176_s15, %s3176_s15 }
 0x10d   : > { %p3179_p7 = pnand %p3177_p5, %p3476_p8  ;;  %p3186_p12 = por %p3185_p11, %p3184_p10 }
 0x10f   : > { %p3180_p9 = pneg %p3179_p7 }
 0x111   : > { %p3187_p4 = pnand %p3186_p12, %p3180_p9 }
 0x113   : > { %3190 = shalt.err (!%p3187_p4)
}
 0x114   : > { %2763 = dma.hbm_to_vmem [thread:$0]  (!%p3462_p6), %s4166_s16, 1024, %s595_s7, [#allocation18], %s4180_s9, %s4180_s9, %s4181_s18  }
 0x115   : > { %s2251_s24 = sadd.s32 4294967294, %s3307_s30   ;;  %s3695_s21 = sadd.s32 1, %s3307_s30  }
 0x116   : > { %s43_s22 = ssub.s32 %s3307_s30, %s3695_s21  ;;  %s46_s2 = sadd.s32 1, %s3303_s29 }
 0x117   : > { %p44_p8 = scmp.eq.s32.totalorder %s43_s22, 0  ;;  %p53_p1 = scmp.ne.s32.totalorder %s3303_s29, %s3299_s28 }
 0x118   : > { %p54_p3 = scmp.eq.s32.totalorder %s3307_s30, 0  ;;  %p59_p13 = scmp.ne.s32.totalorder %s3299_s28, %s3295_s27 }
 0x119   : > { %s3706_s26 = scalar_select %p44_p8, %s3303_s29, %s46_s2  }
 0x11a   : > { %p3708_p0 = por %p54_p3, %p53_p1  ;;  %p4207_p2 = scmp.eq.s32.totalorder %s3444_s1, 0 }
 0x11b   : > { %p440_p5 = scmp.eq.s32.totalorder %s3444_s1, 1  ;;  %p446_p7 = scmp.eq.s32.totalorder %s2251_s24, 1 }
 0x11c   : > { %p3714_p6 = por %p4207_p2, %p59_p13  ;;  %p2782_p9 = scmp.lt.s32.totalorder %s3307_s30, 2 }
 0x11d   : > { %s611_s4 = sand.u32 1, %s3303_s29   ;;  %p3721_p10 = por %p440_p5, %p53_p1 }
 0x11e   : > { %p3725_p11 = por %p446_p7, %p59_p13  ;;  %s2264_s0 = sshll.u32 %s611_s4, 3 }
 0x11f   : > { %s4209_s6 = scalar_select %p3721_p10, 1, 0 }
 0x120   : > { %s4210_s23 = scalar_select %p3725_p11, 1, 0 }
 0x121   : > { %s2367_s25 = sshll.u32 %s3307_s30, 7  ;;  %s4211_s10 = sld [smem:[#allocation28_spill]] }
 0x122   : > { %s615_s24 = scalar_lea.vmem [#allocation2], %s2264_s0  ;;  %p3739_p12 = pnand %p2782_p9, %p3708_p0 }
 0x123   : > { %s622_s2 = sshll.u32 %s615_s24, 4  ;;  %s3743_s18 = scalar_lea.sflag [#allocation3], %s611_s4  ;;  %s3735_s2 = int_to_ptr.vmem [resolvable:$true] %s622_s2 }
 0x124   : > { %p3193_p8 = pneg %p3739_p12 }
 0x127   : > { %s3733_s22 = scalar_lea.hbm %s4211_s10, %s2367_s25  ;;  %s3196_s19 = scalar_lea.hbm %s4211_s10, 256 }
 0x128   : > { %s3191_s15 = scalar_lea.hbm %s3733_s22, 128  ;;  %p3197_p13 = scmp.lt.u32.totalorder %s3733_s22, %s4211_s10 }
 0x129   : > { %p3192_p4 = scmp.ne.s32.totalorder %s3733_s22, %s3191_s15  ;;  %p3198_p0 = scmp.lt.u32.totalorder %s3196_s19, %s3191_s15 }
 0x12a   : > { %p3200_p5 = scmp.lt.u32.totalorder %s3191_s15, %s3733_s22 }
 0x12b   : > { %p3194_p1 = pnand %p3193_p8, %p3192_p4  ;;  %p3199_p2 = por %p3198_p0, %p3197_p13 }
 0x12d   : > { %p3195_p3 = pneg %p3194_p1  ;;  %p3201_p7 = por %p3200_p5, %p3199_p2 }
 0x12f   : > { %p3202_p9 = pnand %p3201_p7, %p3195_p3 }
 0x131   : > { %3205 = shalt.err (!%p3202_p9)
}
 0x132   : > { %s3206_s4 = scalar_lea.vmem %s3735_s2, 128  ;;  %s3321_s0 = smov [#allocation2]  }
 0x133   : > { %p3207_p4 = scmp.ne.s32.totalorder %s3735_s2, %s3206_s4  ;;  %s3211_s25 = sshll.u32 %s3321_s0, 4  ;;  %s3212_s25 = int_to_ptr.vmem [resolvable:$false] %s3211_s25 }
 0x134   : > { %s3213_s17 = scalar_lea.vmem %s3212_s25, 256  ;;  %p3214_p10 = scmp.lt.s32.totalorder %s3735_s2, %s3212_s25 }
 0x135   : > { %p3209_p1 = pnand %p3207_p4, %p3193_p8  ;;  %p3215_p13 = scmp.lt.s32.totalorder %s3213_s17, %s3206_s4 }
 0x137   : > { %p3210_p11 = pneg %p3209_p1  ;;  %p3216_p0 = por %p3215_p13, %p3214_p10 }
 0x139   : > { %p3217_p2 = pnand %p3216_p0, %p3210_p11 }
 0x13b   : > { %3220 = shalt.err (!%p3217_p2)
}
 0x13c   : > { %s4213_s15 = smov 4   ;;  %s4214_s19 = smov 64  }
 0x13d   : > { %2767 = dma.hbm_to_vmem [thread:$0]  (!%p3739_p12), %s3733_s22, 128, %s3735_s2, %s3743_s18, %s4214_s19, %s4214_s19, %s4213_s15  }
 0x13e   : > { %p4215_p8 = scmp.ne.s32.totalorder %s4198_s20, 0 }
 0x13f   : > { %s3777_s24 = sand.u32 (!%p4215_p8), 1, %s3299_s28  }
 0x140   : > { %634 = sbr.rel (%p4215_p8) target bundleno = 2205 (0x89d), region = 92  ;;  %s2268_s4 = sshll.u32 (!%p4215_p8), %s3777_s24, 3 }
 0x141   : > { %s637_s0 = scalar_lea.sflag (!%p4215_p8), [#allocation3], %s3777_s24  ;;  %s3781_s25 = scalar_lea.vmem (!%p4215_p8), [#allocation2], %s2268_s4 }
 0x147   : > { %3266 = dma.done.wait (%p3714_p6), %s637_s0, 128  }
 0x148   : > { %3268 = vsyncadd (%p3714_p6), %s637_s0, 4294967168  ;;  %p4216_p10 = scmp.eq.s32.totalorder %s3444_s1, 0 }
 0x14a   : > { %3270 = dma.done.wait (%p4216_p10), [#allocation6], 528   ;;  %p4217_p11 = pmov %p4216_p10 }
 0x14b   : > { %p4218_p12 = pmov %p4216_p10 }
 0x14c   : > { %3272 = vsyncadd (%p4217_p11), [#allocation6], 4294966768 }
 0x14d   : > { %3274 = dma.done.wait (%p4218_p12), [#allocation9], 272   ;;  %p4219_p3 = pmov %p4216_p10 }
 0x14f   : > { %3276 = vsyncadd (%p4219_p3), [#allocation9], 4294967024  ;;  %p4220_p5 = pmov %p4219_p3 }
 0x150   : > { %p4221_p7 = pmov %p4219_p3 }
 0x151   : > { %3278 = dma.done.wait (%p4220_p5), [#allocation12], 144  }
 0x152   : > { %3280 = vsyncadd (%p4221_p7), [#allocation12], 4294967152  ;;  %p4222_p6 = pmov %p4219_p3 }
 0x153   : > { %p4223_p9 = pmov %p4219_p3 }
 0x154   : > { %3282 = dma.done.wait (%p4222_p6), [#allocation15], 256  }
 0x155   : > { %3284 = vsyncadd (%p4223_p9), [#allocation15], 4294967040  ;;  %p4224_p4 = pmov %p4219_p3 }
 0x156   : > { %p4225_p1 = pmov %p4219_p3 }
 0x157   : > { %3286 = dma.done.wait (%p4224_p4), [#allocation18], 2048  }
 0x158   : > { %3288 = vsyncadd (%p4225_p1), [#allocation18], 4294965248  ;;  %v3322_v0 = vmov 0.0   ;;  %vm3323_vm0 = vmmov 0   ;;  %s4226_s18 = sld [smem:[#allocation29_spill]]  ;;  %v2853_v9 = vld [vmem:[%s3781_s25] sm:$0xff]  }
 0x159   : > { %2471 = vmatprep.subr.bf16.mxu0 %v3322_v0  ;;  %2487 = vmatprep.mubr.msk.bf16.mxu0 %vm3323_vm0, %v3322_v0  ;;  %s4227_s3 = sld [smem:[#allocation31_spill]]  ;;  %vm1009_vm1 = vcmask 130048   ;;  %s4228_s20 = sld [smem:[#allocation32_spill]]  ;;  %v3324_v13 = vmov 0   ;;  %v2280_v28 = vld [vmem:[#allocation5] ss:$0 sm:$0xff] }
 0x15a   : > { %2843 = vset.pattern.permute.xlu0 %v3324_v13  ;;  %2844 = vset.pattern.permute.xlu1 %v3324_v13  ;;  %v2862_v43 = vld [vmem:[#allocation7] sm:$0xff]   ;;  %s4229_s15 = sld [smem:[#allocation34_spill]]  ;;  %vm1402_vm2 = vcmask 523264   ;;  %s4230_s2 = sld [smem:[#allocation37_spill]]  ;;  %vm1693_vm3 = vcmask 261120  }
 0x15b   : > { %s4231_s17 = sld [smem:[#allocation39_spill]]  ;;  %s2279_s25 = sshll.u32 %s3777_s24, 4 }
 0x15c   : > { %s4232_s4 = sld [smem:[#allocation40_spill]]  ;;  %s732_s0 = scalar_lea.vmem [#allocation20], %s2279_s25 }
 0x15d   : > { %s2368_s9 = sshll.u32 %s3444_s1, 8  ;;  %s4233_s22 = sld [smem:[#allocation41_spill]] }
 0x15e   : > { %v2845_v1 = vld [vmem:[%s4226_s18] sm:$0xff]   ;;  %v2846_v2 = vld [vmem:[%s4226_s18 + $0x8] sm:$0xff]   ;;  %v2847_v3 = vld [vmem:[%s4226_s18 + $0x10] sm:$0xff]   ;;  %s2070_s25 = scalar_lea.sflag [#allocation4], %s3777_s24  ;;  %p4234_p0 = scmp.ne.s32.totalorder %s4209_s6, 0 }
 0x15f   : > { %2472 = vmatpush3.bf16.msra.mxu0 %v2845_v1  ;;  %v2848_v4 = vld [vmem:[%s4226_s18 + $0x18] sm:$0xff]   ;;  %v2849_v5 = vld [vmem:[%s4226_s18 + $0x20] sm:$0xff]   ;;  %v2850_v6 = vld [vmem:[%s4226_s18 + $0x28] sm:$0xff]   ;;  %s3325_s1 = smov [#allocation20]  }
 0x160   : > { %2473 = vmatprep.subr.bf16.mxu0 %v3322_v0  ;;  %v2851_v7 = vld [vmem:[%s4226_s18 + $0x30] sm:$0xff]   ;;  %v2852_v8 = vld [vmem:[%s4226_s18 + $0x38] sm:$0xff]   ;;  %v2854_v10 = vld [vmem:[%s4227_s3] sm:$0xff]   ;;  %s3225_s5 = sshll.u32 %s3325_s1, 4  ;;  %s3226_s5 = int_to_ptr.vmem [resolvable:$false] %s3225_s5 }
 0x161   : > { %2493 = vmatprep.mubr.msk.bf16.mxu1 %vm1009_vm1, %v2854_v10  ;;  %v873_v11 = vld [vmem:[%s4228_s20] sm:$0xff]  ;;  %v875_v12 = vld [vmem:[%s4228_s20 + $0x10] sm:$0xff]  ;;  %v874_v14 = vld [vmem:[%s4228_s20 + $0x8] sm:$0xff]  ;;  %s3227_s8 = scalar_lea.vmem %s3226_s5, 512 }
 0x162   : > { %891 = vperm.xlu0 %2843, %v873_v11   ;;  %901 = vperm.xlu1 %2844, %v875_v12   ;;  %v876_v15 = vld [vmem:[%s4228_s20 + $0x18] sm:$0xff]  ;;  %v877_v16 = vld [vmem:[%s4228_s20 + $0x20] sm:$0xff]  ;;  %v878_v17 = vld [vmem:[%s4228_s20 + $0x28] sm:$0xff] }
 0x163   : > { %2474 = vmatpush3.bf16.msra.mxu0 %v2846_v2  ;;  %v879_v18 = vld [vmem:[%s4228_s20 + $0x30] sm:$0xff]  ;;  %v880_v19 = vld [vmem:[%s4228_s20 + $0x38] sm:$0xff]  ;;  %v881_v20 = vld [vmem:[%s4228_s20 + $0x40] sm:$0xff]  ;;  %s4106_s19 = scalar_lea.hbm %s4233_s22, %s2368_s9 }
 0x164   : > { %2475 = vmatprep.subr.bf16.mxu0 %v3322_v0  ;;  %v882_v21 = vld [vmem:[%s4228_s20 + $0x48] sm:$0xff]  ;;  %v883_v22 = vld [vmem:[%s4228_s20 + $0x50] sm:$0xff]  ;;  %v884_v23 = vld [vmem:[%s4228_s20 + $0x58] sm:$0xff] }
 0x165   : > { %v885_v24 = vld [vmem:[%s4228_s20 + $0x60] sm:$0xff]  ;;  %v886_v25 = vld [vmem:[%s4228_s20 + $0x68] sm:$0xff]  ;;  %v887_v26 = vld [vmem:[%s4228_s20 + $0x70] sm:$0xff] }
 0x166   : > { %896 = vperm.xlu0 %2843, %v874_v14   ;;  %906 = vperm.xlu1 %2844, %v876_v15   ;;  %v888_v27 = vld [vmem:[%s4228_s20 + $0x78] sm:$0xff]  ;;  %v2855_v36 = vld [vmem:[%s4227_s3 + $0x8] sm:$0xff]   ;;  %v2856_v37 = vld [vmem:[%s4227_s3 + $0x10] sm:$0xff]  }
 0x167   : > { %2476 = vmatpush3.bf16.msra.mxu0 %v2847_v3  ;;  %v2857_v38 = vld [vmem:[%s4227_s3 + $0x18] sm:$0xff]   ;;  %v2858_v39 = vld [vmem:[%s4227_s3 + $0x20] sm:$0xff]   ;;  %v2859_v40 = vld [vmem:[%s4227_s3 + $0x28] sm:$0xff]  }
 0x168   : > { %2477 = vmatprep.subr.bf16.mxu0 %v3322_v0  ;;  %v2860_v41 = vld [vmem:[%s4227_s3 + $0x30] sm:$0xff]   ;;  %v2861_v42 = vld [vmem:[%s4227_s3 + $0x38] sm:$0xff]   ;;  %v2866_v44 = vld [vmem:[%s4229_s15] sm:$0xff]  }
 0x169   : > { %v2867_v45 = vld [vmem:[%s4229_s15 + $0x8] sm:$0xff]   ;;  %v2868_v46 = vld [vmem:[%s4229_s15 + $0x10] sm:$0xff]   ;;  %v2869_v47 = vld [vmem:[%s4229_s15 + $0x18] sm:$0xff]  }
 0x16a   : > { %911 = vperm.xlu0 %2843, %v877_v16   ;;  %916 = vperm.xlu1 %2844, %v878_v17   ;;  %v2870_v48 = vld [vmem:[%s4229_s15 + $0x20] sm:$0xff]   ;;  %v2871_v49 = vld [vmem:[%s4229_s15 + $0x28] sm:$0xff]   ;;  %v2872_v50 = vld [vmem:[%s4229_s15 + $0x30] sm:$0xff]  }
 0x16b   : > { %2478 = vmatpush3.bf16.msra.mxu0 %v2848_v4 }
 0x16c   : > { %2479 = vmatprep.subr.bf16.mxu0 %v3322_v0 }
 0x16e   : > { %921 = vperm.xlu0 %2843, %v879_v18   ;;  %926 = vperm.xlu1 %2844, %v880_v19  }
 0x16f   : > { %2480 = vmatpush3.bf16.msra.mxu0 %v2849_v5 }
 0x170   : > { %2481 = vmatprep.subr.bf16.mxu0 %v3322_v0 }
 0x172   : > { %931 = vperm.xlu0 %2843, %v881_v20   ;;  %936 = vperm.xlu1 %2844, %v882_v21  }
 0x173   : > { %2482 = vmatpush3.bf16.msra.mxu0 %v2850_v6 }
 0x174   : > { %2483 = vmatprep.subr.bf16.mxu0 %v3322_v0 }
 0x176   : > { %941 = vperm.xlu0 %2843, %v883_v22   ;;  %946 = vperm.xlu1 %2844, %v884_v23  }
 0x177   : > { %2484 = vmatpush3.bf16.msra.mxu0 %v2851_v7 }
 0x178   : > { %2485 = vmatprep.subr.bf16.mxu0 %v3322_v0 }
 0x17a   : > { %951 = vperm.xlu0 %2843, %v885_v24   ;;  %956 = vperm.xlu1 %2844, %v886_v25  }
 0x17b   : > { %2486 = vmatpush3.bf16.msra.mxu0 %v2852_v8 }
 0x17c   : > { %2533 = vmatprep.subr.bf16.mxu0 %v2866_v44 }
 0x17e   : > { %2488 = vmatmul.mubr.bf16.vlgmr.msra.gmra.mrb[0].mxu0 %v2853_v9  ;;  %961 = vperm.xlu0 %2843, %v887_v26  }
 0x17f   : > { %966 = vperm.xlu1 %2844, %v888_v27   ;;  %2534 = vmatpush3.bf16.msra.mxu0 %v2866_v44  ;;  %v2863_v44 = vld [vmem:[#allocation7 + $0x8] sm:$0xff]  }
 0x180   : > { %2535 = vmatprep.subr.bf16.mxu0 %v2867_v45 }
 0x183   : > { %2536 = vmatpush3.bf16.msra.mxu0 %v2867_v45  ;;  %v2864_v45 = vld [vmem:[#allocation7 + $0x10] sm:$0xff]  }
 0x184   : > { %2537 = vmatprep.subr.bf16.mxu0 %v2868_v46 }
 0x187   : > { %2538 = vmatpush3.bf16.msra.mxu0 %v2868_v46  ;;  %v2865_v46 = vld [vmem:[#allocation7 + $0x18] sm:$0xff]  }
 0x188   : > { %2539 = vmatprep.subr.bf16.mxu0 %v2869_v47 }
 0x18b   : > { %2540 = vmatpush3.bf16.msra.mxu0 %v2869_v47  ;;  %v2873_v47 = vld [vmem:[%s4229_s15 + $0x38] sm:$0xff]  }
 0x18c   : > { %2541 = vmatprep.subr.bf16.mxu0 %v2870_v48 }
 0x18f   : > { %2542 = vmatpush3.bf16.msra.mxu0 %v2870_v48 }
 0x190   : > { %2543 = vmatprep.subr.bf16.mxu0 %v2871_v49 }
 0x193   : > { %2544 = vmatpush3.bf16.msra.mxu0 %v2871_v49 }
 0x194   : > { %2545 = vmatprep.subr.bf16.mxu0 %v2872_v50 }
 0x197   : > { %2546 = vmatpush3.bf16.msra.mxu0 %v2872_v50 }
 0x198   : > { %2547 = vmatprep.subr.bf16.mxu0 %v2873_v47 }
 0x19b   : > { %2548 = vmatpush3.bf16.msra.mxu0 %v2873_v47  ;;  %v2893_v47 = vld [vmem:[%s4231_s17 + $0x18] sm:$0xff]  }
 0x1e1   : > { %v892_v51 = vpop.permute.xlu0 %891  ;;  %v902_v52 = vpop.permute.xlu1 %901 }
 0x1e5   : > { %v897_v53 = vpop.permute.xlu0 %896  ;;  %v907_v54 = vpop.permute.xlu1 %906 }
 0x1e9   : > { %v912_v55 = vpop.permute.xlu0 %911  ;;  %v917_v56 = vpop.permute.xlu1 %916 }
 0x1ed   : > { %v922_v58 = vpop.permute.xlu0 %921  ;;  %v927_v60 = vpop.permute.xlu1 %926 }
 0x1f1   : > { %v932_v6 = vpop.permute.xlu0 %931  ;;  %v937_v7 = vpop.permute.xlu1 %936 }
 0x1f5   : > { %v942_v16 = vpop.permute.xlu0 %941  ;;  %v947_v18 = vpop.permute.xlu1 %946 }
 0x1f9   : > { %v952_v23 = vpop.permute.xlu0 %951  ;;  %v957_v27 = vpop.permute.xlu1 %956 }
 0x251   : > { %v849_v29 = vpop.f32.mrb[0].mxu0 }
 0x252   : > { %v2489_v30 = vpop.f32.mrb[1].mxu0  ;;  %v850_v32 = vadd.f32 %v2280_v28, %v849_v29 }
 0x253   : > { %v852_v31 = vpop.f32.mrb[2].mxu0 }
 0x254   : > { %v853_v33 = vadd.f32 %v2280_v28, %v852_v31  ;;  %v2490_v34 = vpop.f32.mrb[3].mxu0 }
 0x256   : > { %v872_v35 = vpack.c.bf16 %v853_v33, %v850_v32  ;;  %v962_v33 = vpop.permute.xlu0 %961 }
 0x258   : > { %2491 = vmatprep.subr.bf16.mxu1 %v872_v35 }
 0x259   : > { %2492 = vmatpush3.bf16.msra.mxu1 %v872_v35  ;;  %v967_v35 = vpop.permute.xlu1 %966 }
 0x25c   : > { %2494 = vmatmul.mubr.msk.bf16.vlgmr.msra.gmra.mrb[0].mxu1 %vm1009_vm1, %v2855_v36 }
 0x25d   : > { %2497 = vmatprep.mubr.msk.bf16.mxu1 %vm1009_vm1, %v2856_v37 }
 0x264   : > { %2498 = vmatmul.mubr.msk.bf16.gmra.mrb[4].mxu1 %vm1009_vm1, %v2857_v38 }
 0x265   : > { %2501 = vmatprep.mubr.msk.bf16.mxu1 %vm1009_vm1, %v2858_v39 }
 0x26c   : > { %2502 = vmatmul.mubr.msk.bf16.gmra.mrb[8].mxu1 %vm1009_vm1, %v2859_v40 }
 0x26d   : > { %2505 = vmatprep.mubr.msk.bf16.mxu1 %vm1009_vm1, %v2860_v41 }
 0x274   : > { %2506 = vmatmul.mubr.msk.bf16.gmra.mrb[12].mxu1 %vm1009_vm1, %v2861_v42 }
 0x275   : > { %2525 = vmatprep.mubr.bf16.mxu1 %v2862_v43 }
 0x32f   : > { %v2495_v57 = vpop.f32.mrb[0].mxu1 }
 0x330   : > { %v1068_v59 = vpop.f32.mrb[1].mxu1  ;;  %v1077_v62 = vadd.f32 %v2495_v57, %v902_v52 }
 0x331   : > { %v2496_v61 = vpop.f32.mrb[2].mxu1  ;;  %v1069_v2 = vadd.f32 %v1068_v59, %v892_v51 }
 0x332   : > { %v1080_v63 = vadd.f32 %v2496_v61, %v907_v54  ;;  %v1071_v1 = vpop.f32.mrb[3].mxu1  ;;  %v2876_v61 = vld [vmem:[%s4230_s2] sm:$0xff]  }
 0x333   : > { %v1072_v3 = vadd.f32 %v1071_v1, %v897_v53  ;;  %v2879_v1 = vld [vmem:[%s4230_s2 + $0x18] sm:$0xff]  }
 0x334   : > { %v3943_v4 = vpack.c.bf16 %v1080_v63, %v1077_v62  ;;  %v2877_v62 = vld [vmem:[%s4230_s2 + $0x8] sm:$0xff]   ;;  %v2878_v63 = vld [vmem:[%s4230_s2 + $0x10] sm:$0xff]  }
 0x335   : > { %v3945_v5 = vpack.c.bf16 %v1072_v3, %v1069_v2  ;;  %v2880_v2 = vld [vmem:[%s4230_s2 + $0x20] sm:$0xff]   ;;  %v2881_v3 = vld [vmem:[%s4230_s2 + $0x28] sm:$0xff]  }
 0x337   : > { %v2499_v8 = vpop.f32.mrb[4].mxu1  ;;  %2509 = vmatprep.subr.bf16.mxu1 %v3945_v5 }
 0x338   : > { %v1084_v9 = vpop.f32.mrb[5].mxu1  ;;  %2510 = vmatpush3.bf16.msra.mxu1 %v3945_v5  ;;  %v1093_v11 = vadd.f32 %v2499_v8, %v922_v58 }
 0x339   : > { %v2500_v10 = vpop.f32.mrb[6].mxu1  ;;  %2511 = vmatprep.subr.bf16.mxu1 %v3943_v4  ;;  %v1085_v14 = vadd.f32 %v1084_v9, %v912_v55 }
 0x33a   : > { %v1096_v12 = vadd.f32 %v2500_v10, %v927_v60  ;;  %v1087_v13 = vpop.f32.mrb[7].mxu1  ;;  %v2874_v60 = vld [vmem:[#allocation10] sm:$0xff]  }
 0x33b   : > { %v1088_v15 = vadd.f32 %v1087_v13, %v917_v56 }
 0x33c   : > { %v3950_v17 = vpack.c.bf16 %v1096_v12, %v1093_v11  ;;  %2512 = vmatpush3.bf16.msra.mxu1 %v3943_v4 }
 0x33d   : > { %v3953_v19 = vpack.c.bf16 %v1088_v15, %v1085_v14 }
 0x33f   : > { %v2503_v20 = vpop.f32.mrb[8].mxu1  ;;  %2513 = vmatprep.subr.bf16.mxu1 %v3953_v19 }
 0x340   : > { %v1100_v21 = vpop.f32.mrb[9].mxu1  ;;  %2514 = vmatpush3.bf16.msra.mxu1 %v3953_v19  ;;  %v1109_v24 = vadd.f32 %v2503_v20, %v942_v16 }
 0x341   : > { %v2504_v22 = vpop.f32.mrb[10].mxu1  ;;  %2515 = vmatprep.subr.bf16.mxu1 %v3950_v17  ;;  %v1101_v28 = vadd.f32 %v1100_v21, %v932_v6  ;;  %v2882_v6 = vld [vmem:[%s4230_s2 + $0x30] sm:$0xff]  }
 0x342   : > { %v1112_v25 = vadd.f32 %v2504_v22, %v947_v18  ;;  %v1103_v26 = vpop.f32.mrb[11].mxu1 }
 0x343   : > { %v1104_v29 = vadd.f32 %v1103_v26, %v937_v7  ;;  %v2310_v7 = vld [vmem:[#allocation8] ss:$0 sm:$0xff] }
 0x344   : > { %v3958_v30 = vpack.c.bf16 %v1112_v25, %v1109_v24  ;;  %2516 = vmatpush3.bf16.msra.mxu1 %v3950_v17 }
 0x345   : > { %v3961_v31 = vpack.c.bf16 %v1104_v29, %v1101_v28 }
 0x347   : > { %v2507_v32 = vpop.f32.mrb[12].mxu1  ;;  %2517 = vmatprep.subr.bf16.mxu1 %v3961_v31 }
 0x348   : > { %v1116_v34 = vpop.f32.mrb[13].mxu1  ;;  %2518 = vmatpush3.bf16.msra.mxu1 %v3961_v31  ;;  %v1125_v37 = vadd.f32 %v2507_v32, %v962_v33 }
 0x349   : > { %v2508_v36 = vpop.f32.mrb[14].mxu1  ;;  %2519 = vmatprep.subr.bf16.mxu1 %v3958_v30  ;;  %v1117_v40 = vadd.f32 %v1116_v34, %v952_v23 }
 0x34a   : > { %v1128_v38 = vadd.f32 %v2508_v36, %v967_v35  ;;  %v1119_v39 = vpop.f32.mrb[15].mxu1 }
 0x34b   : > { %v1120_v41 = vadd.f32 %v1119_v39, %v957_v27 }
 0x34c   : > { %v3966_v42 = vpack.c.bf16 %v1128_v38, %v1125_v37  ;;  %2520 = vmatpush3.bf16.msra.mxu1 %v3958_v30 }
 0x34d   : > { %v3969_v43 = vpack.c.bf16 %v1120_v41, %v1117_v40  ;;  %v2875_v40 = vld [vmem:[#allocation10 + $0x8] sm:$0xff]  }
 0x34f   : > { %2521 = vmatprep.subr.bf16.mxu1 %v3969_v43 }
 0x350   : > { %2522 = vmatpush3.bf16.msra.mxu1 %v3969_v43 }
 0x351   : > { %2523 = vmatprep.subr.bf16.mxu1 %v3966_v42 }
 0x354   : > { %2524 = vmatpush3.bf16.msra.mxu1 %v3966_v42 }
 0x355   : > { %2569 = vmatprep.subr.bf16.mxu1 %v2876_v61 }
 0x357   : > { %2526 = vmatmul.mubr.bf16.vlgmr.msra.gmra.mrb[16].mxu1 %v2863_v44  ;;  %v2887_v44 = vld [vmem:[%s4231_s17] sm:$0xff]  }
 0x358   : > { %2529 = vmatprep.mubr.bf16.mxu1 %v2864_v45  ;;  %2570 = vmatpush3.bf16.msra.mxu1 %v2876_v61  ;;  %v2889_v45 = vld [vmem:[%s4231_s17 + $0x8] sm:$0xff]  }
 0x359   : > { %2571 = vmatprep.subr.bf16.mxu1 %v2877_v62 }
 0x35c   : > { %2572 = vmatpush3.bf16.msra.mxu1 %v2877_v62 }
 0x35d   : > { %2573 = vmatprep.subr.bf16.mxu1 %v2878_v63 }
 0x35f   : > { %2530 = vmatmul.mubr.bf16.gmra.mrb[20].mxu1 %v2865_v46  ;;  %v2891_v46 = vld [vmem:[%s4231_s17 + $0x10] sm:$0xff]  }
 0x360   : > { %2574 = vmatpush3.bf16.msra.mxu1 %v2878_v63 }
 0x361   : > { %2575 = vmatprep.subr.bf16.mxu1 %v2879_v1 }
 0x364   : > { %2576 = vmatpush3.bf16.msra.mxu1 %v2879_v1 }
 0x365   : > { %2577 = vmatprep.subr.bf16.mxu1 %v2880_v2 }
 0x368   : > { %2578 = vmatpush3.bf16.msra.mxu1 %v2880_v2 }
 0x369   : > { %2579 = vmatprep.subr.bf16.mxu1 %v2881_v3 }
 0x36c   : > { %2580 = vmatpush3.bf16.msra.mxu1 %v2881_v3 }
 0x36d   : > { %2581 = vmatprep.subr.bf16.mxu1 %v2882_v6 }
 0x370   : > { %2582 = vmatpush3.bf16.msra.mxu1 %v2882_v6 }
 0x42a   : > { %v2527_v48 = vpop.f32.mrb[16].mxu1 }
 0x42b   : > { %v1205_v49 = vpop.f32.mrb[17].mxu1 }
 0x42c   : > { %v2528_v50 = vpop.f32.mrb[18].mxu1 }
 0x42d   : > { %v1237_v51 = vpack.c.bf16 %v2528_v50, %v2527_v48  ;;  %v1208_v52 = vpop.f32.mrb[19].mxu1  ;;  %v2895_v48 = vld [vmem:[%s4231_s17 + $0x20] sm:$0xff]   ;;  %v2899_v50 = vld [vmem:[%s4231_s17 + $0x30] sm:$0xff]  }
 0x42e   : > { %v1236_v53 = vpack.c.bf16 %v1208_v52, %v1205_v49  ;;  %v2897_v49 = vld [vmem:[%s4231_s17 + $0x28] sm:$0xff]  }
 0x430   : > { %2549 = vmatprep.mubr.bf16.mxu0 %v1236_v53  ;;  %v2901_v53 = vld [vmem:[%s4231_s17 + $0x38] sm:$0xff]  }
 0x431   : > { %2550 = vmatmul.mubr.bf16.vlgmr.msra.gmra.mrb[4].mxu0 %v1237_v51 }
 0x432   : > { %v2531_v54 = vpop.f32.mrb[20].mxu1 }
 0x433   : > { %v1221_v55 = vpop.f32.mrb[21].mxu1 }
 0x434   : > { %v2532_v56 = vpop.f32.mrb[22].mxu1 }
 0x435   : > { %v1239_v57 = vpack.c.bf16 %v2532_v56, %v2531_v54  ;;  %v1224_v58 = vpop.f32.mrb[23].mxu1 }
 0x436   : > { %v1238_v59 = vpack.c.bf16 %v1224_v58, %v1221_v55 }
 0x438   : > { %2553 = vmatprep.mubr.bf16.mxu0 %v1238_v59 }
 0x439   : > { %2554 = vmatmul.mubr.bf16.gmra.mrb[8].mxu0 %v1239_v57  ;;  %v2323_v57 = vld [vmem:[#allocation11] ss:$0 sm:$0xff] }
 0x43a   : > { %2565 = vmatprep.mubr.msk.bf16.mxu0 %vm1402_vm2, %v2874_v60 }
 0x504   : > { %v2551_v8 = vpop.f32.mrb[4].mxu0 }
 0x505   : > { %v1354_v9 = vadd.f32 %v2551_v8, %v2310_v7  ;;  %v1345_v10 = vpop.f32.mrb[5].mxu0 }
 0x506   : > { %v1346_v11 = vadd.f32 %v2310_v7, %v1345_v10  ;;  %v2552_v12 = vpop.f32.mrb[6].mxu0 }
 0x507   : > { %v1357_v13 = vadd.f32 %v2552_v12, %v2310_v7  ;;  %v1348_v14 = vpop.f32.mrb[7].mxu0  ;;  %v1378_v16 = vmax.f32 %v1354_v9, 0.0  ;;  %v2888_v12 = vld [vmem:[#allocation17] sm:$0xff]  }
 0x508   : > { %v1349_v15 = vadd.f32 %v2310_v7, %v1348_v14  ;;  %v1376_v20 = vmax.f32 %v1346_v11, 0.0  ;;  %v2886_v11 = vld [vmem:[#allocation16] sm:$0xff]  }
 0x509   : > { %v1379_v18 = vmax.f32 %v1357_v13, 0.0 }
 0x50a   : > { %v1377_v21 = vmax.f32 %v1349_v15, 0.0  ;;  %v2890_v15 = vld [vmem:[#allocation17 + $0x8] sm:$0xff]  }
 0x50b   : > { %v1389_v22 = vpack.c.bf16 %v1379_v18, %v1378_v16  ;;  %v2903_v18 = vld [vmem:[#allocation19] sm:$0xff]  }
 0x50c   : > { %v1388_v23 = vpack.c.bf16 %v1377_v21, %v1376_v20  ;;  %v2555_v24 = vpop.f32.mrb[8].mxu0 }
 0x50d   : > { %v1370_v25 = vadd.f32 %v2555_v24, %v2310_v7  ;;  %v1361_v26 = vpop.f32.mrb[9].mxu0  ;;  %v2894_v24 = vld [vmem:[#allocation17 + $0x18] sm:$0xff]  }
 0x50e   : > { %v1362_v27 = vadd.f32 %v2310_v7, %v1361_v26  ;;  %v2556_v28 = vpop.f32.mrb[10].mxu0  ;;  %2557 = vmatprep.subr.bf16.mxu0 %v1388_v23  ;;  %v2896_v26 = vld [vmem:[#allocation17 + $0x20] sm:$0xff]  }
 0x50f   : > { %v1373_v29 = vadd.f32 %v2556_v28, %v2310_v7  ;;  %v1364_v32 = vpop.f32.mrb[11].mxu0  ;;  %2558 = vmatpush3.bf16.msra.mxu0 %v1388_v23  ;;  %v1382_v34 = vmax.f32 %v1370_v25, 0.0  ;;  %v2905_v25 = vld [vmem:[#allocation19 + $0x10] sm:$0xff]   ;;  %v2898_v28 = vld [vmem:[#allocation17 + $0x28] sm:$0xff]  }
 0x510   : > { %v1365_v33 = vadd.f32 %v2310_v7, %v1364_v32  ;;  %2559 = vmatprep.subr.bf16.mxu0 %v1389_v22  ;;  %v1380_v36 = vmax.f32 %v1362_v27, 0.0  ;;  %v2906_v27 = vld [vmem:[#allocation19 + $0x18] sm:$0xff]   ;;  %v2900_v32 = vld [vmem:[#allocation17 + $0x30] sm:$0xff]  }
 0x511   : > { %v1383_v35 = vmax.f32 %v1373_v29, 0.0  ;;  %v2907_v29 = vld [vmem:[#allocation19 + $0x20] sm:$0xff]  }
 0x512   : > { %v1381_v37 = vmax.f32 %v1365_v33, 0.0  ;;  %v2908_v33 = vld [vmem:[#allocation19 + $0x28] sm:$0xff]  }
 0x513   : > { %v1391_v38 = vpack.c.bf16 %v1383_v35, %v1382_v34  ;;  %2560 = vmatpush3.bf16.msra.mxu0 %v1389_v22  ;;  %v2902_v34 = vld [vmem:[#allocation17 + $0x38] sm:$0xff]   ;;  %v2909_v35 = vld [vmem:[#allocation19 + $0x30] sm:$0xff]  }
 0x514   : > { %v1390_v39 = vpack.c.bf16 %v1381_v37, %v1380_v36  ;;  %v2910_v36 = vld [vmem:[#allocation19 + $0x38] sm:$0xff]  }
 0x516   : > { %2561 = vmatprep.subr.bf16.mxu0 %v1390_v39 }
 0x517   : > { %2562 = vmatpush3.bf16.msra.mxu0 %v1390_v39 }
 0x518   : > { %2563 = vmatprep.subr.bf16.mxu0 %v1391_v38 }
 0x51b   : > { %2564 = vmatpush3.bf16.msra.mxu0 %v1391_v38 }
 0x51c   : > { %2589 = vmatprep.subr.bf16.mxu0 %v3322_v0 }
 0x51e   : > { %2566 = vmatmul.mubr.msk.bf16.vlgmr.msra.gmra.mrb[12].mxu0 %vm1402_vm2, %v2875_v40 }
 0x51f   : > { %2590 = vmatpush3.bf16.msra.mxu0 %v3945_v5  ;;  %2605 = vmatprep.mubr.msk.bf16.mxu0 %vm3323_vm0, %v3322_v0  ;;  %v2885_v5 = vld [vmem:[#allocation13] sm:$0xff]  }
 0x520   : > { %2591 = vmatprep.subr.bf16.mxu0 %v3322_v0 }
 0x523   : > { %2592 = vmatpush3.bf16.msra.mxu0 %v3943_v4  ;;  %v2883_v4 = vld [vmem:[%s4230_s2 + $0x38] sm:$0xff]   ;;  %s2083_s2 = sshll.u32 %s732_s0, 4  ;;  %s4101_s2 = int_to_ptr.vmem [resolvable:$true] %s2083_s2 }
 0x524   : > { %2593 = vmatprep.subr.bf16.mxu0 %v3322_v0  ;;  %2583 = vmatprep.subr.bf16.mxu1 %v2883_v4  ;;  %p3228_p10 = scmp.lt.s32.totalorder %s4101_s2, %s3226_s5 }
 0x525   : > { %2584 = vmatpush3.bf16.msra.mxu1 %v2883_v4 }
 0x526   : > { %2609 = vmatprep.subr.bf16.mxu1 %v3322_v0 }
 0x527   : > { %2594 = vmatpush3.bf16.msra.mxu0 %v3953_v19 }
 0x528   : > { %2595 = vmatprep.subr.bf16.mxu0 %v3322_v0 }
 0x52b   : > { %2596 = vmatpush3.bf16.msra.mxu0 %v3950_v17 }
 0x52c   : > { %2597 = vmatprep.subr.bf16.mxu0 %v3322_v0 }
 0x52f   : > { %2598 = vmatpush3.bf16.msra.mxu0 %v3961_v31 }
 0x530   : > { %2599 = vmatprep.subr.bf16.mxu0 %v3322_v0 }
 0x533   : > { %2600 = vmatpush3.bf16.msra.mxu0 %v3958_v30 }
 0x534   : > { %2601 = vmatprep.subr.bf16.mxu0 %v3322_v0 }
 0x537   : > { %2602 = vmatpush3.bf16.msra.mxu0 %v3969_v43  ;;  %v2884_v43 = vld [vmem:[#allocation14] sm:$0xff]  }
 0x538   : > { %2603 = vmatprep.subr.bf16.mxu0 %v3322_v0 }
 0x53b   : > { %2604 = vmatpush3.bf16.msra.mxu0 %v3966_v42 }
 0x53c   : > { %2621 = vmatprep.subr.bf16.mxu0 %v3322_v0 }
 0x53e   : > { %2606 = vmatmul.mubr.bf16.vlgmr.msra.gmra.mrb[16].mxu0 %v2885_v5 }
 0x53f   : > { %2625 = vmatprep.mubr.msk.bf16.mxu0 %vm3323_vm0, %v3322_v0 }
 0x5f1   : > { %v2567_v17 = vpop.f32.mrb[12].mxu0 }
 0x5f2   : > { %v1443_v19 = vpop.f32.mrb[13].mxu0 }
 0x5f3   : > { %v2568_v30 = vpop.f32.mrb[14].mxu0 }
 0x5f4   : > { %v1459_v31 = vpack.c.bf16 %v2568_v30, %v2567_v17  ;;  %v1446_v41 = vpop.f32.mrb[15].mxu0 }
 0x5f5   : > { %v1458_v42 = vpack.c.bf16 %v1446_v41, %v1443_v19 }
 0x5f7   : > { %2585 = vmatprep.mubr.bf16.mxu1 %v1458_v42 }
 0x5f8   : > { %2586 = vmatmul.mubr.bf16.vlgmr.msra.gmra.mrb[24].mxu1 %v1459_v31 }
 0x5f9   : > { %2610 = vmatpush3.bf16.msra.mxu1 %v1388_v23  ;;  %2617 = vmatprep.mubr.msk.bf16.mxu1 %vm3323_vm0, %v3322_v0  ;;  %v2904_v23 = vld [vmem:[#allocation19 + $0x8] sm:$0xff]  }
 0x5fa   : > { %2611 = vmatprep.subr.bf16.mxu1 %v3322_v0 }
 0x5fd   : > { %2612 = vmatpush3.bf16.msra.mxu1 %v1389_v22  ;;  %v2892_v22 = vld [vmem:[#allocation17 + $0x10] sm:$0xff]  }
 0x5fe   : > { %2613 = vmatprep.subr.bf16.mxu1 %v3322_v0 }
 0x601   : > { %2614 = vmatpush3.bf16.msra.mxu1 %v1390_v39 }
 0x602   : > { %2615 = vmatprep.subr.bf16.mxu1 %v3322_v0 }
 0x605   : > { %2616 = vmatpush3.bf16.msra.mxu1 %v1391_v38 }
 0x606   : > { %2629 = vmatprep.subr.bf16.mxu1 %v3322_v0 }
 0x608   : > { %2618 = vmatmul.mubr.msk.bf16.vlgmr.msra.gmra.mrb[28].mxu1 %vm1402_vm2, %v2884_v43 }
 0x609   : > { %2645 = vmatprep.mubr.msk.bf16.mxu1 %vm3323_vm0, %v3322_v0  ;;  %2630 = vmatpush3.bf16.msra.mxu1 %v2887_v44 }
 0x60a   : > { %2631 = vmatprep.subr.bf16.mxu1 %v3322_v0 }
 0x60d   : > { %2632 = vmatpush3.bf16.msra.mxu1 %v2889_v45 }
 0x60e   : > { %2633 = vmatprep.subr.bf16.mxu1 %v3322_v0 }
 0x611   : > { %2634 = vmatpush3.bf16.msra.mxu1 %v2891_v46  ;;  %v4062_v51 = vpop.f32.mrb[16].mxu0  ;;  %v2361_v46 = vld [vmem:[%s4232_s4] ss:$0 sm:$0xff]  ;;  %s3221_s4 = scalar_lea.vmem %s4101_s2, 256 }
 0x612   : > { %2635 = vmatprep.subr.bf16.mxu1 %v3322_v0  ;;  %v2607_v52 = vpop.f32.mrb[17].mxu0  ;;  %p3222_p13 = scmp.ne.s32.totalorder %s4101_s2, %s3221_s4  ;;  %p3229_p11 = scmp.lt.s32.totalorder %s3227_s8, %s3221_s4 }
 0x613   : > { %v4068_v54 = vpop.f32.mrb[18].mxu0 }
 0x614   : > { %v1738_v55 = vpack.c.bf16 %v4068_v54, %v4062_v51  ;;  %v2608_v56 = vpop.f32.mrb[19].mxu0  ;;  %p3223_p2 = pnand %p3222_p13, %p4234_p0  ;;  %p3230_p12 = por %p3229_p11, %p3228_p10 }
 0x615   : > { %2636 = vmatpush3.bf16.msra.mxu1 %v2893_v47 }
 0x616   : > { %2637 = vmatprep.subr.bf16.mxu1 %v3322_v0  ;;  %p3224_p8 = pneg %p3223_p2 }
 0x618   : > { %p3231_p3 = pnand %p3230_p12, %p3224_p8 }
 0x619   : > { %2638 = vmatpush3.bf16.msra.mxu1 %v2895_v48 }
 0x61a   : > { %2639 = vmatprep.subr.bf16.mxu1 %v3322_v0 }
 0x61d   : > { %2640 = vmatpush3.bf16.msra.mxu1 %v2897_v49 }
 0x61e   : > { %2641 = vmatprep.subr.bf16.mxu1 %v3322_v0 }
 0x621   : > { %2642 = vmatpush3.bf16.msra.mxu1 %v2899_v50 }
 0x622   : > { %2643 = vmatprep.subr.bf16.mxu1 %v3322_v0 }
 0x625   : > { %2644 = vmatpush3.bf16.msra.mxu1 %v2901_v53 }
 0x626   : > { %2669 = vmatprep.subr.bf16.mxu1 %v3322_v0 }
 0x6cb   : > { %v2587_v58 = vpop.f32.mrb[24].mxu1 }
 0x6cc   : > { %v1574_v59 = vadd.f32 %v2587_v58, %v2323_v57  ;;  %v1565_v60 = vpop.f32.mrb[25].mxu1 }
 0x6cd   : > { %v1566_v61 = vadd.f32 %v2323_v57, %v1565_v60  ;;  %v2588_v62 = vpop.f32.mrb[26].mxu1 }
 0x6ce   : > { %v1577_v63 = vadd.f32 %v2588_v62, %v2323_v57  ;;  %v1568_v1 = vpop.f32.mrb[27].mxu1  ;;  %v1582_v3 = vmax.f32 %v1574_v59, 0.0 }
 0x6cf   : > { %v1569_v2 = vadd.f32 %v2323_v57, %v1568_v1  ;;  %v1580_v7 = vmax.f32 %v1566_v61, 0.0 }
 0x6d0   : > { %v1583_v6 = vmax.f32 %v1577_v63, 0.0 }
 0x6d1   : > { %v1581_v8 = vmax.f32 %v1569_v2, 0.0 }
 0x6d2   : > { %v1687_v9 = vpack.c.bf16 %v1583_v6, %v1582_v3 }
 0x6d3   : > { %v1686_v10 = vpack.c.bf16 %v1581_v8, %v1580_v7 }
 0x6d5   : > { %2622 = vmatpush3.bf16.msra.mxu0 %v1686_v10 }
 0x6d6   : > { %2623 = vmatprep.subr.bf16.mxu0 %v3322_v0 }
 0x6d9   : > { %2624 = vmatpush3.bf16.msra.mxu0 %v1687_v9 }
 0x6da   : > { %2649 = vmatprep.subr.bf16.mxu0 %v3322_v0 }
 0x6db   : > { %v1677_v13 = vpop.f32.mrb[28].mxu1 }
 0x6dc   : > { %2626 = vmatmul.mubr.msk.bf16.vlgmr.msra.gmra.mrb[20].mxu0 %vm1693_vm3, %v2886_v11  ;;  %v2619_v14 = vpop.f32.mrb[29].mxu1 }
 0x6dd   : > { %2650 = vmatpush3.bf16.msra.mxu0 %v2888_v12  ;;  %v1680_v16 = vpop.f32.mrb[30].mxu1  ;;  %2665 = vmatprep.mubr.msk.bf16.mxu0 %vm3323_vm0, %v3322_v0 }
 0x6de   : > { %2651 = vmatprep.subr.bf16.mxu0 %v3322_v0  ;;  %v1755_v20 = vpack.c.bf16 %v1680_v16, %v1677_v13  ;;  %v2620_v21 = vpop.f32.mrb[31].mxu1 }
 0x6e0   : > { %2646 = vmatmul.mubr.bf16.vlgmr.msra.gmra.mrb[32].mxu1 %v1755_v20 }
 0x6e1   : > { %2652 = vmatpush3.bf16.msra.mxu0 %v2890_v15  ;;  %2670 = vmatpush3.bf16.msra.mxu1 %v2903_v18 }
 0x6e2   : > { %2653 = vmatprep.subr.bf16.mxu0 %v3322_v0  ;;  %2671 = vmatprep.subr.bf16.mxu1 %v3322_v0 }
 0x6e3   : > { %2685 = vmatprep.mubr.msk.bf16.mxu1 %vm3323_vm0, %v3322_v0 }
 0x6e5   : > { %2654 = vmatpush3.bf16.msra.mxu0 %v2892_v22  ;;  %2672 = vmatpush3.bf16.msra.mxu1 %v2904_v23 }
 0x6e6   : > { %2655 = vmatprep.subr.bf16.mxu0 %v3322_v0  ;;  %2673 = vmatprep.subr.bf16.mxu1 %v3322_v0 }
 0x6e9   : > { %2656 = vmatpush3.bf16.msra.mxu0 %v2894_v24  ;;  %2674 = vmatpush3.bf16.msra.mxu1 %v2905_v25 }
 0x6ea   : > { %2657 = vmatprep.subr.bf16.mxu0 %v3322_v0  ;;  %2675 = vmatprep.subr.bf16.mxu1 %v3322_v0 }
 0x6ed   : > { %2658 = vmatpush3.bf16.msra.mxu0 %v2896_v26  ;;  %2676 = vmatpush3.bf16.msra.mxu1 %v2906_v27 }
 0x6ee   : > { %2659 = vmatprep.subr.bf16.mxu0 %v3322_v0  ;;  %2677 = vmatprep.subr.bf16.mxu1 %v3322_v0 }
 0x6f1   : > { %2660 = vmatpush3.bf16.msra.mxu0 %v2898_v28  ;;  %2678 = vmatpush3.bf16.msra.mxu1 %v2907_v29 }
 0x6f2   : > { %2661 = vmatprep.subr.bf16.mxu0 %v3322_v0  ;;  %2679 = vmatprep.subr.bf16.mxu1 %v3322_v0 }
 0x6f5   : > { %2662 = vmatpush3.bf16.msra.mxu0 %v2900_v32  ;;  %2680 = vmatpush3.bf16.msra.mxu1 %v2908_v33 }
 0x6f6   : > { %2663 = vmatprep.subr.bf16.mxu0 %v3322_v0  ;;  %2681 = vmatprep.subr.bf16.mxu1 %v3322_v0 }
 0x6f9   : > { %2664 = vmatpush3.bf16.msra.mxu0 %v2902_v34  ;;  %2682 = vmatpush3.bf16.msra.mxu1 %v2909_v35 }
 0x6fa   : > { %2683 = vmatprep.subr.bf16.mxu1 %v3322_v0 }
 0x6fc   : > { %2666 = vmatmul.mubr.bf16.vlgmr.msra.gmra.mrb[24].mxu0 %v1738_v55 }
 0x6fd   : > { %2684 = vmatpush3.bf16.msra.mxu1 %v2910_v36 }
 0x7af   : > { %v1731_v37 = vpop.f32.mrb[20].mxu0 }
 0x7b0   : > { %v2627_v38 = vpop.f32.mrb[21].mxu0 }
 0x7b1   : > { %v1734_v39 = vpop.f32.mrb[22].mxu0 }
 0x7b2   : > { %v1950_v40 = vpack.c.bf16 %v1734_v39, %v1731_v37  ;;  %v2628_v4 = vpop.f32.mrb[23].mxu0 }
 0x7b3   : > { %v1854_v5 = vpop.f32.mrb[32].mxu1 }
 0x7b4   : > { %2686 = vmatmul.mubr.bf16.vlgmr.msra.gmra.mrb[36].mxu1 %v1950_v40  ;;  %v2647_v17 = vpop.f32.mrb[33].mxu1 }
 0x7b5   : > { %v1857_v19 = vpop.f32.mrb[34].mxu1 }
 0x7b6   : > { %v2648_v30 = vpop.f32.mrb[35].mxu1 }
 0x7cf   : > { %v1943_v31 = vpop.f32.mrb[24].mxu0 }
 0x7d0   : > { %v1944_v0 = vadd.f32 %v1943_v31, %v1854_v5  ;;  %v2667_v41 = vpop.f32.mrb[25].mxu0 }
 0x7d1   : > { %v1946_v42 = vpop.f32.mrb[26].mxu0 }
 0x7d2   : > { %v1947_v43 = vadd.f32 %v1946_v42, %v1857_v19  ;;  %v2668_v44 = vpop.f32.mrb[27].mxu0 }
 0x887   : > { %v2049_v45 = vpop.f32.mrb[36].mxu1 }
 0x888   : > { %v2056_v47 = vadd.f32 %v2049_v45, %v1944_v0  ;;  %v2687_v48 = vpop.f32.mrb[37].mxu1 }
 0x889   : > { %v2052_v49 = vpop.f32.mrb[38].mxu1 }
 0x88a   : > { %v2065_v50 = vadd.f32 %v2361_v46, %v2056_v47  ;;  %v2057_v51 = vadd.f32 %v2052_v49, %v1947_v43  ;;  %v2688_v52 = vpop.f32.mrb[39].mxu1 }
 0x88c   : > { %2067 = vst [vmem:[%s732_s0] sm:$0xff] %v2065_v50  ;;  %v2066_v53 = vadd.f32 %v2361_v46, %v2057_v51 }
 0x88e   : > { %2068 = vst [vmem:[%s732_s0 + $0x8] sm:$0xff] %v2066_v53 }
 0x88f   : > { %3234 = shalt.err (!%p3231_p3)
}
 0x890   : > { %s3235_s3 = scalar_lea.hbm %s4106_s19, 256  ;;  %s3239_s7 = scalar_lea.hbm %s4233_s22, 512 }
 0x891   : > { %p3236_p5 = scmp.ne.s32.totalorder %s4106_s19, %s3235_s3  ;;  %p3240_p9 = scmp.lt.u32.totalorder %s4106_s19, %s4233_s22 }
 0x892   : > { %p3241_p4 = scmp.lt.u32.totalorder %s3239_s7, %s3235_s3  ;;  %p3243_p13 = scmp.lt.u32.totalorder %s3235_s3, %s4106_s19 }
 0x893   : > { %p3237_p7 = pnand %p3236_p5, %p4234_p0 }
 0x894   : > { %p3242_p1 = por %p3241_p4, %p3240_p9 }
 0x895   : > { %p3238_p6 = pneg %p3237_p7 }
 0x896   : > { %p3244_p2 = por %p3243_p13, %p3242_p1 }
 0x898   : > { %p3245_p8 = pnand %p3244_p2, %p3238_p6 }
 0x89a   : > { %3248 = shalt.err (!%p3245_p8)
}
 0x89b   : > { %s3326_s8 = smov 128   ;;  %s3327_s4 = smov 8  }
 0x89c   : > { %2731 = dma.vmem_to_hbm [thread:$0]  (%p4234_p0), %s4101_s2, 256, %s4106_s19, %s2070_s25, %s3326_s8, %s3326_s8, %s3327_s4  }
 0x89d PF: > { %s2098_s0 = sand.u32 1, %s3295_s27   ;;  %p4235_p10 = scmp.ne.s32.totalorder %s4210_s23, 0 }
 0x89e   : > { %p4236_p11 = scmp.ge.s32.totalorder %s3307_s30, 2  ;;  %s2099_s3 = scalar_lea.sflag [#allocation4], %s2098_s0 }
 0x8a0   : > { %p2769_p12 = pnand %p4236_p11, %p4235_p10 }
 0x8a2   : > { %3290 = dma.done.wait (!%p2769_p12), %s2099_s3, 256  }
 0x8a3   : > { %3292 = vsyncadd (!%p2769_p12), %s2099_s3, 4294967040  ;;  %p36_p3 = scmp.ge.s32.totalorder %s3695_s21, 4   ;;  %s4237_s27 = smov %s3299_s28 }
 0x8a4   : > { %s4238_s28 = smov %s3303_s29  ;;  %s4239_s29 = smov %s3706_s26 }
 0x8a5   : > { %s4240_s30 = smov %s3695_s21  ;;  %38 = sbr.rel (!%p36_p3) target bundleno = 25 (0x19), region = 177 }
 0x8ac   :  { %2104 = vsyncpa [#allocation3], 1 }
 0x8ad   :  { %2106 = vsyncpa [#allocation3 + $0x1], 1 }
 0x8ae   :  { %2107 = vsyncpa [#allocation6], 1 }
 0x8af   :  { %2108 = vsyncpa [#allocation9], 1 }
 0x8b0   :  { %2109 = vsyncpa [#allocation12], 1 }
 0x8b1   :  { %2110 = vsyncpa [#allocation15], 1 }
 0x8b2   :  { %2111 = vsyncpa [#allocation18], 1 }
 0x8b3   :  { %2112 = vsyncpa [#allocation4], 1 }
 0x8b4   :  { %2114 = vsyncpa [#allocation4 + $0x1], 1 }

</bundles_post_ra>
